<compile_context>
chip_gen: v6e
topology: v6e:2x2x1
jax: 0.10.0
libtpu: 0.0.40
codegen_flags: <defaults>
</compile_context>

<pallas_src>
import functools

import jax
import jax.numpy as jnp
from jax.experimental import pallas as pl
from jax.experimental.pallas import tpu as pltpu

BN_EPS = 1e-5
LANE = 128


def _round_up(v, m):
    return ((v + m - 1) // m) * m


# ---------------------------------------------------------------------------------------------
# Kernels: one grid step == one batch element, every tile is a clean 2-D (N, C) slab.
# ---------------------------------------------------------------------------------------------

def _sage_relu(x_cd, adjn_cd, wrel, brel, wroot):
    """relu( (adj_norm @ x) @ W_rel + b_rel + x @ W_root ) with f32 MXU accumulation."""
    agg = jnp.dot(adjn_cd, x_cd, preferred_element_type=jnp.float32)            # (N, Cin) f32
    h = (jnp.dot(agg.astype(x_cd.dtype), wrel, preferred_element_type=jnp.float32)
         + jnp.dot(x_cd, wroot, preferred_element_type=jnp.float32)
         + brel)                                                                 # (N, Cout) f32
    return jnp.maximum(h, 0.0)


def _write_stats(stats_ref, h):
    # Per-batch BatchNorm partials: row 0 = sum over nodes, row 1 = sum of squares.
    stats_ref[0, 0:1, :] = jnp.sum(h, axis=0, keepdims=True)
    stats_ref[0, 1:2, :] = jnp.sum(h * h, axis=0, keepdims=True)


def _sage1_kernel(x_ref, adj_ref, wrel_ref, brel_ref, wroot_ref,
                  adjn_ref, hpre_ref, stats_ref):
    # Degree-normalize the adjacency ONCE and emit it for layers 2/3 to reuse.
    adj = adj_ref[0].astype(jnp.float32)                                         # (N, N)
    deg = jnp.sum(adj, axis=-1, keepdims=True)
    # NOTE: pl.reciprocal(..., approx=True) would move this divide to the EUP, but the exact
    #       divide keeps the strict f32 check tight and only touches (N, 1) elements once.
    adjn = (adj / jnp.maximum(deg, 1.0)).astype(adjn_ref.dtype)
    adjn_ref[0] = adjn

    h = _sage_relu(x_ref[0], adjn, wrel_ref[...], brel_ref[...], wroot_ref[...])
    hpre_ref[0] = h
    _write_stats(stats_ref, h)


def _bn_sage_kernel(h_ref, scale_ref, shift_ref, adjn_ref,
                    wrel_ref, brel_ref, wroot_ref,
                    xpost_ref, hpre_ref, stats_ref):
    # Folded BatchNorm of the previous layer (f32 elementwise), then SAGE + ReLU.
    x = (h_ref[0] * scale_ref[...] + shift_ref[...]).astype(xpost_ref.dtype)
    xpost_ref[0] = x                       # post-BN activation, reused by the final Linear
    h = _sage_relu(x, adjn_ref[0], wrel_ref[...], brel_ref[...], wroot_ref[...])
    hpre_ref[0] = h
    _write_stats(stats_ref, h)


def _final_kernel(x1_ref, x2_ref, h3_ref, scale3_ref, shift3_ref,
                  wcat_ref, blin_ref, out_ref):
    # bn3 apply + Linear over cat([x1, x2, x3]) fused into ONE matmul (K = 3 * 128 lanes).
    x3 = (h3_ref[0] * scale3_ref[...] + shift3_ref[...]).astype(x1_ref.dtype)
    xcat = jnp.concatenate([x1_ref[0], x2_ref[0], x3], axis=-1)
    y = jnp.dot(xcat, wcat_ref[...], preferred_element_type=jnp.float32) + blin_ref[...]
    out_ref[0] = jnp.maximum(y, 0.0).astype(out_ref.dtype)


# ---------------------------------------------------------------------------------------------
# pallas_call wrappers (BlockSpecs / grid)
# ---------------------------------------------------------------------------------------------

def _batch_spec(n, c):
    return pl.BlockSpec((1, n, c), lambda b: (b, 0, 0))


def _full_spec(shape):
    return pl.BlockSpec(shape, lambda b: (0, 0))


def _bn_scale_shift(stats, gamma, beta, count):
    """Reduce per-batch partials -> fold biased batch stats + affine into scale/shift (tiny glue)."""
    total = jnp.sum(stats, axis=0)                               # (2, C_pad)
    mean = total[0] / count
    var = jnp.maximum(total[1] / count - mean * mean, 0.0)       # biased batch variance
    scale = gamma * jax.lax.rsqrt(var + BN_EPS)                  # (1, C_pad)
    shift = beta - mean[None, :] * scale
    return scale, shift


def _sage1_call(xp, adj_cd, wrel, brel, wroot, hid_p, cp):
    B, N, cin_p = xp.shape
    return pl.pallas_call(
        _sage1_kernel,
        out_shape=(jax.ShapeDtypeStruct((B, N, N), xp.dtype),             # adj_norm (reused)
                   jax.ShapeDtypeStruct((B, N, hid_p), jnp.float32),      # h1 (pre-BN)
                   jax.ShapeDtypeStruct((B, 2, hid_p), jnp.float32)),     # BN partials
        grid_spec=pltpu.PrefetchScalarGridSpec(
            num_scalar_prefetch=0, grid=(B,),
            in_specs=[_batch_spec(N, cin_p),
                      _batch_spec(N, N),
                      _full_spec((cin_p, hid_p)),
                      _full_spec((1, hid_p)),
                      _full_spec((cin_p, hid_p))],
            out_specs=[_batch_spec(N, N),
                       _batch_spec(N, hid_p),
                       pl.BlockSpec((1, 2, hid_p), lambda b: (b, 0, 0))]),
        compiler_params=cp,
    )(xp, adj_cd, wrel, brel, wroot)


def _bn_sage_call(h_prev, scale, shift, adjn, wrel, brel, wroot, cp):
    B, N, cin_p = h_prev.shape
    cout_p = wrel.shape[1]
    return pl.pallas_call(
        _bn_sage_kernel,
        out_shape=(jax.ShapeDtypeStruct((B, N, cin_p), adjn.dtype),       # x_prev post-BN
                   jax.ShapeDtypeStruct((B, N, cout_p), jnp.float32),     # h (pre-BN)
                   jax.ShapeDtypeStruct((B, 2, cout_p), jnp.float32)),    # BN partials
        grid_spec=pltpu.PrefetchScalarGridSpec(
            num_scalar_prefetch=0, grid=(B,),
            in_specs=[_batch_spec(N, cin_p),
                      _full_spec((1, cin_p)),
                      _full_spec((1, cin_p)),
                      _batch_spec(N, N),
                      _full_spec((cin_p, cout_p)),
                      _full_spec((1, cout_p)),
                      _full_spec((cin_p, cout_p))],
            out_specs=[_batch_spec(N, cin_p),
                       _batch_spec(N, cout_p),
                       pl.BlockSpec((1, 2, cout_p), lambda b: (b, 0, 0))]),
        compiler_params=cp,
    )(h_prev, scale, shift, adjn, wrel, brel, wroot)


def _final_call(x1, x2, h3, scale3, shift3, wcat, blin, cp):
    B, N, hid_p = x1.shape
    co_p = h3.shape[-1]
    kcat = wcat.shape[0]
    return pl.pallas_call(
        _final_kernel,
        out_shape=jax.ShapeDtypeStruct((B, N, co_p), jnp.float32),        # lane-dense output slab
        grid_spec=pltpu.PrefetchScalarGridSpec(
            num_scalar_prefetch=0, grid=(B,),
            in_specs=[_batch_spec(N, hid_p),
                      _batch_spec(N, hid_p),
                      _batch_spec(N, co_p),
                      _full_spec((1, co_p)),
                      _full_spec((1, co_p)),
                      _full_spec((kcat, co_p)),
                      _full_spec((1, co_p))],
            out_specs=_batch_spec(N, co_p)),
        compiler_params=cp,
    )(x1, x2, h3, scale3, shift3, wcat, blin)


@functools.partial(jax.jit, static_argnames=("compute_dtype",))
def gnn_diff_forward(x, adj, params, compute_dtype=jnp.float32):
    """GNN_diff forward (training-mode BN, mask=None) as 4 batch-gridded Pallas calls."""
    # TODO(synk): for very large N, add a node-tile grid axis (adj blocks (1, N_tile, N)).
    B, N, cin = x.shape
    hidden = params['wrel1'].shape[1]
    cout = params['wrel3'].shape[1]
    assert N % 8 == 0, "node count must be a multiple of the 8-sublane tile"

    cin_p, hid_p, co_p = (_round_up(c, LANE) for c in (cin, hidden, cout))
    cd = compute_dtype
    f32 = jnp.float32

    def pad_w(w, r, c):   # zero-pad a weight to (r, c) and cast to the matmul dtype
        return jnp.pad(w, ((0, r - w.shape[0]), (0, c - w.shape[1]))).astype(cd)

    def pad_v(v, c):      # zero-pad a (1, C) vector; stays f32 (elementwise math is f32)
        return jnp.pad(v, ((0, 0), (0, c - v.shape[1]))).astype(f32)

    # Lane-dense (128-padded) operands.  Zero padding (weights, biases, gamma, beta) keeps the
    # padded channels exactly 0 through every layer, so numerics match the unpadded reference.
    xp = jnp.pad(x, ((0, 0), (0, 0), (0, cin_p - cin))).astype(cd)
    adj_cd = adj.astype(cd)                      # 0/1 entries: lossless even in bf16

    wrel1 = pad_w(params['wrel1'], cin_p, hid_p); wroot1 = pad_w(params['wroot1'], cin_p, hid_p)
    wrel2 = pad_w(params['wrel2'], hid_p, hid_p); wroot2 = pad_w(params['wroot2'], hid_p, hid_p)
    wrel3 = pad_w(params['wrel3'], hid_p, co_p); wroot3 = pad_w(params['wroot3'], hid_p, co_p)
    brel1 = pad_v(params['brel1'], hid_p)
    brel2 = pad_v(params['brel2'], hid_p)
    brel3 = pad_v(params['brel3'], co_p)
    g1, be1 = pad_v(params['g1'], hid_p), pad_v(params['be1'], hid_p)
    g2, be2 = pad_v(params['g2'], hid_p), pad_v(params['be2'], hid_p)
    g3, be3 = pad_v(params['g3'], co_p), pad_v(params['be3'], co_p)
    # Final Linear over cat([x1, x2, x3]) fused into one (2*hid_p + co_p, co_p) weight.
    wcat = jnp.concatenate([pad_w(params['wl1'], hid_p, co_p),
                            pad_w(params['wl2'], hid_p, co_p),
                            pad_w(params['wl3'], co_p, co_p)], axis=0)
    blin = pad_v(params['bl'], co_p)

    cp = pltpu.CompilerParams(dimension_semantics=("parallel",),
                              vmem_limit_bytes=32 * 1024 * 1024)

    # layer 1: adjacency-normalize + SAGE + ReLU (emits per-batch BN partials)
    adjn, h1, st1 = _sage1_call(xp, adj_cd, wrel1, brel1, wroot1, hid_p, cp)
    s1, t1 = _bn_scale_shift(st1, g1, be1, B * N)

    # layer 2: bn1-apply + SAGE + ReLU (also emits x1 = bn1(h1) for the final Linear)
    x1, h2, st2 = _bn_sage_call(h1, s1, t1, adjn, wrel2, brel2, wroot2, cp)
    s2, t2 = _bn_scale_shift(st2, g2, be2, B * N)

    # layer 3: bn2-apply + SAGE + ReLU
    x2, h3, st3 = _bn_sage_call(h2, s2, t2, adjn, wrel3, brel3, wroot3, cp)
    s3, t3 = _bn_scale_shift(st3, g3, be3, B * N)

    # bn3-apply + fused concat Linear + ReLU, then strip the lane padding.
    out_pad = _final_call(x1, x2, h3, s3, t3, wcat, blin, cp)
    return out_pad[..., :cout]


# ---------------------------------------------------------------------------------------------
# Pure-JAX reference + synthetic params
# ---------------------------------------------------------------------------------------------

def gnn_diff_reference(x, adj, p):
    deg = jnp.maximum(adj.sum(-1, keepdims=True), 1.0)

    def sage(x, wr, br, wro):
        agg = jnp.einsum('bij,bjc->bic', adj, x) / deg
        return agg @ wr + br + x @ wro

    def bn(x, g, b):
        mu = x.mean(axis=(0, 1), keepdims=True)
        var = ((x - mu) ** 2).mean(axis=(0, 1), keepdims=True)
        return (x - mu) / jnp.sqrt(var + BN_EPS) * g + b

    x1 = bn(jax.nn.relu(sage(x, p['wrel1'], p['brel1'], p['wroot1'])), p['g1'], p['be1'])
    x2 = bn(jax.nn.relu(sage(x1, p['wrel2'], p['brel2'], p['wroot2'])), p['g2'], p['be2'])
    x3 = bn(jax.nn.relu(sage(x2, p['wrel3'], p['brel3'], p['wroot3'])), p['g3'], p['be3'])
    cat = jnp.concatenate([x1, x2, x3], axis=-1)
    w_lin = jnp.concatenate([p['wl1'], p['wl2'], p['wl3']], axis=0)
    return jax.nn.relu(cat @ w_lin + p['bl'])


def init_params(key, in_channels, hidden, out_channels):
    ks = jax.random.split(key, 20)

    def w(k, i, o):
        return jax.random.normal(k, (i, o), jnp.float32) / jnp.sqrt(float(i))

    def v(k, o):
        return 0.1 * jax.random.normal(k, (1, o), jnp.float32)

    return {
        'wrel1': w(ks[0], in_channels, hidden), 'brel1': v(ks[1], hidden),
        'wroot1': w(ks[2], in_channels, hidden),
        'wrel2': w(ks[3], hidden, hidden), 'brel2': v(ks[4], hidden),
        'wroot2': w(ks[5], hidden, hidden),
        'wrel3': w(ks[6], hidden, out_channels), 'brel3': v(ks[7], out_channels),
        'wroot3': w(ks[8], hidden, out_channels),
        'g1': 1.0 + v(ks[9], hidden), 'be1': v(ks[10], hidden),
        'g2': 1.0 + v(ks[11], hidden), 'be2': v(ks[12], hidden),
        'g3': 1.0 + v(ks[13], out_channels), 'be3': v(ks[14], out_channels),
        'wl1': w(ks[15], hidden, out_channels),
        'wl2': w(ks[16], hidden, out_channels),
        'wl3': w(ks[17], out_channels, out_channels),
        'bl': v(ks[18], out_channels),
    }


if __name__ == "__main__":
    key = jax.random.PRNGKey(0)
    B, N = 2, 16
    in_channels, hidden, out_channels = 8, 32, 16

    k_x, k_adj, k_p = jax.random.split(key, 3)
    x = jax.random.normal(k_x, (B, N, in_channels), jnp.float32)
    adj = (jax.random.uniform(k_adj, (B, N, N)) > 0.5).astype(jnp.float32)
    adj = jnp.maximum(adj, jnp.swapaxes(adj, 1, 2))  # symmetric dense adjacency

    params = init_params(k_p, in_channels, hidden, out_channels)
    ref = gnn_diff_reference(x, adj, params)

    # f32 matmul path: strict check against the pure-JAX reference.
    out = jax.block_until_ready(gnn_diff_forward(x, adj, params))
    assert out.shape == (B, N, out_channels), out.shape
    assert out.dtype == jnp.float32
    assert jnp.allclose(out, ref, atol=5e-4, rtol=5e-4), float(jnp.max(jnp.abs(out - ref)))

    # bf16 matmul operands (f32 accumulation, f32 BN/ReLU): loose relative-error check.
    out_bf16 = jax.block_until_ready(
        gnn_diff_forward(x, adj, params, compute_dtype=jnp.bfloat16))
    assert out_bf16.shape == (B, N, out_channels)
    rel = float(jnp.linalg.norm(out_bf16 - ref) / (jnp.linalg.norm(ref) + 1e-12))
    assert rel < 0.1, rel

    print("KERNEL_OK")
</pallas_src>

<mosaic_0001>
module attributes {stable_mosaic.version = 11 : i64} {
  func.func @_sage1_kernel(%arg0: i32, %arg1: memref<1x16x128xf32, #tpu.memory_space<vmem>>, %arg2: memref<1x16x16xf32, #tpu.memory_space<vmem>>, %arg3: memref<128x128xf32, #tpu.memory_space<vmem>>, %arg4: memref<1x128xf32, #tpu.memory_space<vmem>>, %arg5: memref<128x128xf32, #tpu.memory_space<vmem>>, %arg6: memref<1x16x16xf32, #tpu.memory_space<vmem>>, %arg7: memref<1x16x128xf32, #tpu.memory_space<vmem>>, %arg8: memref<1x2x128xf32, #tpu.memory_space<vmem>>) attributes {dimension_semantics = [#tpu.dimension_semantics<parallel>], iteration_bounds = array<i64: 2>, scalar_prefetch = 0 : i64, scratch_operands = 0 : i64, tpu.core_type = #tpu.core_type<tc>, window_params = [{transform_indices = @transform_0, window_bounds = array<i64: 1, 16, 128>}, {transform_indices = @transform_1, window_bounds = array<i64: 1, 16, 16>}, {pipeline_mode = #tpu.pipeline_mode<synchronous>, transform_indices = @transform_2, window_bounds = array<i64: 128, 128>}, {pipeline_mode = #tpu.pipeline_mode<synchronous>, transform_indices = @transform_3, window_bounds = array<i64: 1, 128>}, {pipeline_mode = #tpu.pipeline_mode<synchronous>, transform_indices = @transform_4, window_bounds = array<i64: 128, 128>}, {transform_indices = @transform_5, window_bounds = array<i64: 1, 16, 16>}, {transform_indices = @transform_6, window_bounds = array<i64: 1, 16, 128>}, {transform_indices = @transform_7, window_bounds = array<i64: 1, 2, 128>}]} {
    %c0 = arith.constant 0 : index
    %c0_0 = arith.constant 0 : index
    %c0_1 = arith.constant 0 : index
    %0 = vector.load %arg2[%c0, %c0_0, %c0_1] : memref<1x16x16xf32, #tpu.memory_space<vmem>>, vector<1x16x16xf32>
    %1 = vector.shape_cast %0 : vector<1x16x16xf32> to vector<16x16xf32>
    %cst = arith.constant dense<0.000000e+00> : vector<16xf32>
    %2 = vector.multi_reduction <add>, %1, %cst [1] : vector<16x16xf32> to vector<16xf32>
    %3 = vector.shape_cast %2 : vector<16xf32> to vector<16x1xf32>
    %cst_2 = arith.constant 1.000000e+00 : f32
    %4 = vector.broadcast %cst_2 : f32 to vector<16x1xf32>
    %5 = arith.maximumf %3, %4 : vector<16x1xf32>
    %6 = vector.broadcast %5 : vector<16x1xf32> to vector<16x16xf32>
    %7 = arith.divf %1, %6 : vector<16x16xf32>
    %c0_3 = arith.constant 0 : index
    %c0_4 = arith.constant 0 : index
    %c0_5 = arith.constant 0 : index
    %8 = vector.load %arg6[%c0_3, %c0_4, %c0_5] : memref<1x16x16xf32, #tpu.memory_space<vmem>>, vector<1x16x16xf32>
    %9 = vector.shape_cast %8 : vector<1x16x16xf32> to vector<16x16xf32>
    %10 = vector.shape_cast %7 : vector<16x16xf32> to vector<1x16x16xf32>
    tpu.vector_store %arg6[%c0_3, %c0_4, %c0_5], %10 {strides = array<i32>} : memref<1x16x16xf32, #tpu.memory_space<vmem>>, vector<1x16x16xf32>,
    %c0_6 = arith.constant 0 : index
    %c0_7 = arith.constant 0 : index
    %c0_8 = arith.constant 0 : index
    %11 = vector.load %arg1[%c0_6, %c0_7, %c0_8] : memref<1x16x128xf32, #tpu.memory_space<vmem>>, vector<1x16x128xf32>
    %12 = vector.shape_cast %11 : vector<1x16x128xf32> to vector<16x128xf32>
    %c0_9 = arith.constant 0 : index
    %c0_10 = arith.constant 0 : index
    %13 = vector.load %arg3[%c0_9, %c0_10] : memref<128x128xf32, #tpu.memory_space<vmem>>, vector<128x128xf32>
    %c0_11 = arith.constant 0 : index
    %c0_12 = arith.constant 0 : index
    %14 = vector.load %arg4[%c0_11, %c0_12] : memref<1x128xf32, #tpu.memory_space<vmem>>, vector<1x128xf32>
    %c0_13 = arith.constant 0 : index
    %c0_14 = arith.constant 0 : index
    %15 = vector.load %arg5[%c0_13, %c0_14] : memref<128x128xf32, #tpu.memory_space<vmem>>, vector<128x128xf32>
    %cst_15 = arith.constant dense<0.000000e+00> : vector<16x128xf32>
    %16 = tpu.matmul %7, %12, %cst_15 {dimension_numbers = #tpu.dot_dimension_numbers<[1], [0], [0], [1], [0, 0, 1, 1], [], []>} : vector<16x16xf32>, vector<16x128xf32>, vector<16x128xf32> -> vector<16x128xf32>
    %cst_16 = arith.constant dense<0.000000e+00> : vector<16x128xf32>
    %17 = tpu.matmul %16, %13, %cst_16 {dimension_numbers = #tpu.dot_dimension_numbers<[1], [0], [0], [1], [0, 0, 1, 1], [], []>} : vector<16x128xf32>, vector<128x128xf32>, vector<16x128xf32> -> vector<16x128xf32>
    %cst_17 = arith.constant dense<0.000000e+00> : vector<16x128xf32>
    %18 = tpu.matmul %12, %15, %cst_17 {dimension_numbers = #tpu.dot_dimension_numbers<[1], [0], [0], [1], [0, 0, 1, 1], [], []>} : vector<16x128xf32>, vector<128x128xf32>, vector<16x128xf32> -> vector<16x128xf32>
    %19 = arith.addf %17, %18 : vector<16x128xf32>
    %20 = vector.broadcast %14 : vector<1x128xf32> to vector<16x128xf32>
    %21 = arith.addf %19, %20 : vector<16x128xf32>
    %cst_18 = arith.constant 0.000000e+00 : f32
    %22 = vector.broadcast %cst_18 : f32 to vector<16x128xf32>
    %23 = arith.maximumf %21, %22 : vector<16x128xf32>
    %c0_19 = arith.constant 0 : index
    %c0_20 = arith.constant 0 : index
    %c0_21 = arith.constant 0 : index
    %24 = vector.load %arg7[%c0_19, %c0_20, %c0_21] : memref<1x16x128xf32, #tpu.memory_space<vmem>>, vector<1x16x128xf32>
    %25 = vector.shape_cast %24 : vector<1x16x128xf32> to vector<16x128xf32>
    %26 = vector.shape_cast %23 : vector<16x128xf32> to vector<1x16x128xf32>
    tpu.vector_store %arg7[%c0_19, %c0_20, %c0_21], %26 {strides = array<i32>} : memref<1x16x128xf32, #tpu.memory_space<vmem>>, vector<1x16x128xf32>,
    %cst_22 = arith.constant dense<0.000000e+00> : vector<128xf32>
    %27 = vector.multi_reduction <add>, %23, %cst_22 [0] : vector<16x128xf32> to vector<128xf32>
    %28 = vector.shape_cast %27 : vector<128xf32> to vector<1x128xf32>
    %c0_23 = arith.constant 0 : index
    %c0_24 = arith.constant 0 : index
    %c0_25 = arith.constant 0 : index
    %29 = vector.load %arg8[%c0_23, %c0_24, %c0_25] : memref<1x2x128xf32, #tpu.memory_space<vmem>>, vector<1x1x128xf32>
    %30 = vector.shape_cast %29 : vector<1x1x128xf32> to vector<1x128xf32>
    %31 = vector.shape_cast %28 : vector<1x128xf32> to vector<1x1x128xf32>
    tpu.vector_store %arg8[%c0_23, %c0_24, %c0_25], %31 {strides = array<i32>} : memref<1x2x128xf32, #tpu.memory_space<vmem>>, vector<1x1x128xf32>,
    %32 = arith.mulf %23, %23 : vector<16x128xf32>
    %cst_26 = arith.constant dense<0.000000e+00> : vector<128xf32>
    %33 = vector.multi_reduction <add>, %32, %cst_26 [0] : vector<16x128xf32> to vector<128xf32>
    %34 = vector.shape_cast %33 : vector<128xf32> to vector<1x128xf32>
    %c0_27 = arith.constant 0 : index
    %c1 = arith.constant 1 : index
    %c0_28 = arith.constant 0 : index
    %35 = vector.load %arg8[%c0_27, %c1, %c0_28] : memref<1x2x128xf32, #tpu.memory_space<vmem>>, vector<1x1x128xf32>
    %36 = vector.shape_cast %35 : vector<1x1x128xf32> to vector<1x128xf32>
    %37 = vector.shape_cast %34 : vector<1x128xf32> to vector<1x1x128xf32>
    tpu.vector_store %arg8[%c0_27, %c1, %c0_28], %37 {strides = array<i32>} : memref<1x2x128xf32, #tpu.memory_space<vmem>>, vector<1x1x128xf32>,
    return
  }
  func.func @transform_0(%arg0: i32) -> (i32, i32, i32) {
    %c0_i32 = arith.constant 0 : i32
    %c0_i32_0 = arith.constant 0 : i32
    %c0_i32_1 = arith.constant 0 : i32
    return %arg0, %c0_i32, %c0_i32_0 : i32, i32, i32
  }
  func.func @transform_1(%arg0: i32) -> (i32, i32, i32) {
    %c0_i32 = arith.constant 0 : i32
    %c0_i32_0 = arith.constant 0 : i32
    %c0_i32_1 = arith.constant 0 : i32
    return %arg0, %c0_i32, %c0_i32_0 : i32, i32, i32
  }
  func.func @transform_2(%arg0: i32) -> (i32, i32) {
    %c0_i32 = arith.constant 0 : i32
    %c0_i32_0 = arith.constant 0 : i32
    %c0_i32_1 = arith.constant 0 : i32
    return %c0_i32, %c0_i32_0 : i32, i32
  }
  func.func @transform_3(%arg0: i32) -> (i32, i32) {
    %c0_i32 = arith.constant 0 : i32
    %c0_i32_0 = arith.constant 0 : i32
    %c0_i32_1 = arith.constant 0 : i32
    return %c0_i32, %c0_i32_0 : i32, i32
  }
  func.func @transform_4(%arg0: i32) -> (i32, i32) {
    %c0_i32 = arith.constant 0 : i32
    %c0_i32_0 = arith.constant 0 : i32
    %c0_i32_1 = arith.constant 0 : i32
    return %c0_i32, %c0_i32_0 : i32, i32
  }
  func.func @transform_5(%arg0: i32) -> (i32, i32, i32) {
    %c0_i32 = arith.constant 0 : i32
    %c0_i32_0 = arith.constant 0 : i32
    %c0_i32_1 = arith.constant 0 : i32
    return %arg0, %c0_i32, %c0_i32_0 : i32, i32, i32
  }
  func.func @transform_6(%arg0: i32) -> (i32, i32, i32) {
    %c0_i32 = arith.constant 0 : i32
    %c0_i32_0 = arith.constant 0 : i32
    %c0_i32_1 = arith.constant 0 : i32
    return %arg0, %c0_i32, %c0_i32_0 : i32, i32, i32
  }
  func.func @transform_7(%arg0: i32) -> (i32, i32, i32) {
    %c0_i32 = arith.constant 0 : i32
    %c0_i32_0 = arith.constant 0 : i32
    %c0_i32_1 = arith.constant 0 : i32
    return %arg0, %c0_i32, %c0_i32_0 : i32, i32, i32
  }
}

module attributes {stable_mosaic.version = 11 : i64} {
  func.func @_bn_sage_kernel(%arg0: i32, %arg1: memref<1x16x128xf32, #tpu.memory_space<vmem>>, %arg2: memref<1x128xf32, #tpu.memory_space<vmem>>, %arg3: memref<1x128xf32, #tpu.memory_space<vmem>>, %arg4: memref<1x16x16xf32, #tpu.memory_space<vmem>>, %arg5: memref<128x128xf32, #tpu.memory_space<vmem>>, %arg6: memref<1x128xf32, #tpu.memory_space<vmem>>, %arg7: memref<128x128xf32, #tpu.memory_space<vmem>>, %arg8: memref<1x16x128xf32, #tpu.memory_space<vmem>>, %arg9: memref<1x16x128xf32, #tpu.memory_space<vmem>>, %arg10: memref<1x2x128xf32, #tpu.memory_space<vmem>>) attributes {dimension_semantics = [#tpu.dimension_semantics<parallel>], iteration_bounds = array<i64: 2>, scalar_prefetch = 0 : i64, scratch_operands = 0 : i64, tpu.core_type = #tpu.core_type<tc>, window_params = [{transform_indices = @transform_0, window_bounds = array<i64: 1, 16, 128>}, {pipeline_mode = #tpu.pipeline_mode<synchronous>, transform_indices = @transform_1, window_bounds = array<i64: 1, 128>}, {pipeline_mode = #tpu.pipeline_mode<synchronous>, transform_indices = @transform_2, window_bounds = array<i64: 1, 128>}, {transform_indices = @transform_3, window_bounds = array<i64: 1, 16, 16>}, {pipeline_mode = #tpu.pipeline_mode<synchronous>, transform_indices = @transform_4, window_bounds = array<i64: 128, 128>}, {pipeline_mode = #tpu.pipeline_mode<synchronous>, transform_indices = @transform_5, window_bounds = array<i64: 1, 128>}, {pipeline_mode = #tpu.pipeline_mode<synchronous>, transform_indices = @transform_6, window_bounds = array<i64: 128, 128>}, {transform_indices = @transform_7, window_bounds = array<i64: 1, 16, 128>}, {transform_indices = @transform_8, window_bounds = array<i64: 1, 16, 128>}, {transform_indices = @transform_9, window_bounds = array<i64: 1, 2, 128>}]} {
    %c0 = arith.constant 0 : index
    %c0_0 = arith.constant 0 : index
    %c0_1 = arith.constant 0 : index
    %0 = vector.load %arg1[%c0, %c0_0, %c0_1] : memref<1x16x128xf32, #tpu.memory_space<vmem>>, vector<1x16x128xf32>
    %1 = vector.shape_cast %0 : vector<1x16x128xf32> to vector<16x128xf32>
    %c0_2 = arith.constant 0 : index
    %c0_3 = arith.constant 0 : index
    %2 = vector.load %arg2[%c0_2, %c0_3] : memref<1x128xf32, #tpu.memory_space<vmem>>, vector<1x128xf32>
    %3 = vector.broadcast %2 : vector<1x128xf32> to vector<16x128xf32>
    %4 = arith.mulf %1, %3 : vector<16x128xf32>
    %c0_4 = arith.constant 0 : index
    %c0_5 = arith.constant 0 : index
    %5 = vector.load %arg3[%c0_4, %c0_5] : memref<1x128xf32, #tpu.memory_space<vmem>>, vector<1x128xf32>
    %6 = vector.broadcast %5 : vector<1x128xf32> to vector<16x128xf32>
    %7 = arith.addf %4, %6 : vector<16x128xf32>
    %c0_6 = arith.constant 0 : index
    %c0_7 = arith.constant 0 : index
    %c0_8 = arith.constant 0 : index
    %8 = vector.load %arg8[%c0_6, %c0_7, %c0_8] : memref<1x16x128xf32, #tpu.memory_space<vmem>>, vector<1x16x128xf32>
    %9 = vector.shape_cast %8 : vector<1x16x128xf32> to vector<16x128xf32>
    %10 = vector.shape_cast %7 : vector<16x128xf32> to vector<1x16x128xf32>
    tpu.vector_store %arg8[%c0_6, %c0_7, %c0_8], %10 {strides = array<i32>} : memref<1x16x128xf32, #tpu.memory_space<vmem>>, vector<1x16x128xf32>,
    %c0_9 = arith.constant 0 : index
    %c0_10 = arith.constant 0 : index
    %c0_11 = arith.constant 0 : index
    %11 = vector.load %arg4[%c0_9, %c0_10, %c0_11] : memref<1x16x16xf32, #tpu.memory_space<vmem>>, vector<1x16x16xf32>
    %12 = vector.shape_cast %11 : vector<1x16x16xf32> to vector<16x16xf32>
    %c0_12 = arith.constant 0 : index
    %c0_13 = arith.constant 0 : index
    %13 = vector.load %arg5[%c0_12, %c0_13] : memref<128x128xf32, #tpu.memory_space<vmem>>, vector<128x128xf32>
    %c0_14 = arith.constant 0 : index
    %c0_15 = arith.constant 0 : index
    %14 = vector.load %arg6[%c0_14, %c0_15] : memref<1x128xf32, #tpu.memory_space<vmem>>, vector<1x128xf32>
    %c0_16 = arith.constant 0 : index
    %c0_17 = arith.constant 0 : index
    %15 = vector.load %arg7[%c0_16, %c0_17] : memref<128x128xf32, #tpu.memory_space<vmem>>, vector<128x128xf32>
    %cst = arith.constant dense<0.000000e+00> : vector<16x128xf32>
    %16 = tpu.matmul %12, %7, %cst {dimension_numbers = #tpu.dot_dimension_numbers<[1], [0], [0], [1], [0, 0, 1, 1], [], []>} : vector<16x16xf32>, vector<16x128xf32>, vector<16x128xf32> -> vector<16x128xf32>
    %cst_18 = arith.constant dense<0.000000e+00> : vector<16x128xf32>
    %17 = tpu.matmul %16, %13, %cst_18 {dimension_numbers = #tpu.dot_dimension_numbers<[1], [0], [0], [1], [0, 0, 1, 1], [], []>} : vector<16x128xf32>, vector<128x128xf32>, vector<16x128xf32> -> vector<16x128xf32>
    %cst_19 = arith.constant dense<0.000000e+00> : vector<16x128xf32>
    %18 = tpu.matmul %7, %15, %cst_19 {dimension_numbers = #tpu.dot_dimension_numbers<[1], [0], [0], [1], [0, 0, 1, 1], [], []>} : vector<16x128xf32>, vector<128x128xf32>, vector<16x128xf32> -> vector<16x128xf32>
    %19 = arith.addf %17, %18 : vector<16x128xf32>
    %20 = vector.broadcast %14 : vector<1x128xf32> to vector<16x128xf32>
    %21 = arith.addf %19, %20 : vector<16x128xf32>
    %cst_20 = arith.constant 0.000000e+00 : f32
    %22 = vector.broadcast %cst_20 : f32 to vector<16x128xf32>
    %23 = arith.maximumf %21, %22 : vector<16x128xf32>
    %c0_21 = arith.constant 0 : index
    %c0_22 = arith.constant 0 : index
    %c0_23 = arith.constant 0 : index
    %24 = vector.load %arg9[%c0_21, %c0_22, %c0_23] : memref<1x16x128xf32, #tpu.memory_space<vmem>>, vector<1x16x128xf32>
    %25 = vector.shape_cast %24 : vector<1x16x128xf32> to vector<16x128xf32>
    %26 = vector.shape_cast %23 : vector<16x128xf32> to vector<1x16x128xf32>
    tpu.vector_store %arg9[%c0_21, %c0_22, %c0_23], %26 {strides = array<i32>} : memref<1x16x128xf32, #tpu.memory_space<vmem>>, vector<1x16x128xf32>,
    %cst_24 = arith.constant dense<0.000000e+00> : vector<128xf32>
    %27 = vector.multi_reduction <add>, %23, %cst_24 [0] : vector<16x128xf32> to vector<128xf32>
    %28 = vector.shape_cast %27 : vector<128xf32> to vector<1x128xf32>
    %c0_25 = arith.constant 0 : index
    %c0_26 = arith.constant 0 : index
    %c0_27 = arith.constant 0 : index
    %29 = vector.load %arg10[%c0_25, %c0_26, %c0_27] : memref<1x2x128xf32, #tpu.memory_space<vmem>>, vector<1x1x128xf32>
    %30 = vector.shape_cast %29 : vector<1x1x128xf32> to vector<1x128xf32>
    %31 = vector.shape_cast %28 : vector<1x128xf32> to vector<1x1x128xf32>
    tpu.vector_store %arg10[%c0_25, %c0_26, %c0_27], %31 {strides = array<i32>} : memref<1x2x128xf32, #tpu.memory_space<vmem>>, vector<1x1x128xf32>,
    %32 = arith.mulf %23, %23 : vector<16x128xf32>
    %cst_28 = arith.constant dense<0.000000e+00> : vector<128xf32>
    %33 = vector.multi_reduction <add>, %32, %cst_28 [0] : vector<16x128xf32> to vector<128xf32>
    %34 = vector.shape_cast %33 : vector<128xf32> to vector<1x128xf32>
    %c0_29 = arith.constant 0 : index
    %c1 = arith.constant 1 : index
    %c0_30 = arith.constant 0 : index
    %35 = vector.load %arg10[%c0_29, %c1, %c0_30] : memref<1x2x128xf32, #tpu.memory_space<vmem>>, vector<1x1x128xf32>
    %36 = vector.shape_cast %35 : vector<1x1x128xf32> to vector<1x128xf32>
    %37 = vector.shape_cast %34 : vector<1x128xf32> to vector<1x1x128xf32>
    tpu.vector_store %arg10[%c0_29, %c1, %c0_30], %37 {strides = array<i32>} : memref<1x2x128xf32, #tpu.memory_space<vmem>>, vector<1x1x128xf32>,
    return
  }
  func.func @transform_0(%arg0: i32) -> (i32, i32, i32) {
    %c0_i32 = arith.constant 0 : i32
    %c0_i32_0 = arith.constant 0 : i32
    %c0_i32_1 = arith.constant 0 : i32
    return %arg0, %c0_i32, %c0_i32_0 : i32, i32, i32
  }
  func.func @transform_1(%arg0: i32) -> (i32, i32) {
    %c0_i32 = arith.constant 0 : i32
    %c0_i32_0 = arith.constant 0 : i32
    %c0_i32_1 = arith.constant 0 : i32
    return %c0_i32, %c0_i32_0 : i32, i32
  }
  func.func @transform_2(%arg0: i32) -> (i32, i32) {
    %c0_i32 = arith.constant 0 : i32
    %c0_i32_0 = arith.constant 0 : i32
    %c0_i32_1 = arith.constant 0 : i32
    return %c0_i32, %c0_i32_0 : i32, i32
  }
  func.func @transform_3(%arg0: i32) -> (i32, i32, i32) {
    %c0_i32 = arith.constant 0 : i32
    %c0_i32_0 = arith.constant 0 : i32
    %c0_i32_1 = arith.constant 0 : i32
    return %arg0, %c0_i32, %c0_i32_0 : i32, i32, i32
  }
  func.func @transform_4(%arg0: i32) -> (i32, i32) {
    %c0_i32 = arith.constant 0 : i32
    %c0_i32_0 = arith.constant 0 : i32
    %c0_i32_1 = arith.constant 0 : i32
    return %c0_i32, %c0_i32_0 : i32, i32
  }
  func.func @transform_5(%arg0: i32) -> (i32, i32) {
    %c0_i32 = arith.constant 0 : i32
    %c0_i32_0 = arith.constant 0 : i32
    %c0_i32_1 = arith.constant 0 : i32
    return %c0_i32, %c0_i32_0 : i32, i32
  }
  func.func @transform_6(%arg0: i32) -> (i32, i32) {
    %c0_i32 = arith.constant 0 : i32
    %c0_i32_0 = arith.constant 0 : i32
    %c0_i32_1 = arith.constant 0 : i32
    return %c0_i32, %c0_i32_0 : i32, i32
  }
  func.func @transform_7(%arg0: i32) -> (i32, i32, i32) {
    %c0_i32 = arith.constant 0 : i32
    %c0_i32_0 = arith.constant 0 : i32
    %c0_i32_1 = arith.constant 0 : i32
    return %arg0, %c0_i32, %c0_i32_0 : i32, i32, i32
  }
  func.func @transform_8(%arg0: i32) -> (i32, i32, i32) {
    %c0_i32 = arith.constant 0 : i32
    %c0_i32_0 = arith.constant 0 : i32
    %c0_i32_1 = arith.constant 0 : i32
    return %arg0, %c0_i32, %c0_i32_0 : i32, i32, i32
  }
  func.func @transform_9(%arg0: i32) -> (i32, i32, i32) {
    %c0_i32 = arith.constant 0 : i32
    %c0_i32_0 = arith.constant 0 : i32
    %c0_i32_1 = arith.constant 0 : i32
    return %arg0, %c0_i32, %c0_i32_0 : i32, i32, i32
  }
}

module attributes {stable_mosaic.version = 11 : i64} {
  func.func @_final_kernel(%arg0: i32, %arg1: memref<1x16x128xf32, #tpu.memory_space<vmem>>, %arg2: memref<1x16x128xf32, #tpu.memory_space<vmem>>, %arg3: memref<1x16x128xf32, #tpu.memory_space<vmem>>, %arg4: memref<1x128xf32, #tpu.memory_space<vmem>>, %arg5: memref<1x128xf32, #tpu.memory_space<vmem>>, %arg6: memref<384x128xf32, #tpu.memory_space<vmem>>, %arg7: memref<1x128xf32, #tpu.memory_space<vmem>>, %arg8: memref<1x16x128xf32, #tpu.memory_space<vmem>>) attributes {dimension_semantics = [#tpu.dimension_semantics<parallel>], iteration_bounds = array<i64: 2>, scalar_prefetch = 0 : i64, scratch_operands = 0 : i64, tpu.core_type = #tpu.core_type<tc>, window_params = [{transform_indices = @transform_0, window_bounds = array<i64: 1, 16, 128>}, {transform_indices = @transform_1, window_bounds = array<i64: 1, 16, 128>}, {transform_indices = @transform_2, window_bounds = array<i64: 1, 16, 128>}, {pipeline_mode = #tpu.pipeline_mode<synchronous>, transform_indices = @transform_3, window_bounds = array<i64: 1, 128>}, {pipeline_mode = #tpu.pipeline_mode<synchronous>, transform_indices = @transform_4, window_bounds = array<i64: 1, 128>}, {pipeline_mode = #tpu.pipeline_mode<synchronous>, transform_indices = @transform_5, window_bounds = array<i64: 384, 128>}, {pipeline_mode = #tpu.pipeline_mode<synchronous>, transform_indices = @transform_6, window_bounds = array<i64: 1, 128>}, {transform_indices = @transform_7, window_bounds = array<i64: 1, 16, 128>}]} {
    %c0 = arith.constant 0 : index
    %c0_0 = arith.constant 0 : index
    %c0_1 = arith.constant 0 : index
    %0 = vector.load %arg3[%c0, %c0_0, %c0_1] : memref<1x16x128xf32, #tpu.memory_space<vmem>>, vector<1x16x128xf32>
    %1 = vector.shape_cast %0 : vector<1x16x128xf32> to vector<16x128xf32>
    %c0_2 = arith.constant 0 : index
    %c0_3 = arith.constant 0 : index
    %2 = vector.load %arg4[%c0_2, %c0_3] : memref<1x128xf32, #tpu.memory_space<vmem>>, vector<1x128xf32>
    %3 = vector.broadcast %2 : vector<1x128xf32> to vector<16x128xf32>
    %4 = arith.mulf %1, %3 : vector<16x128xf32>
    %c0_4 = arith.constant 0 : index
    %c0_5 = arith.constant 0 : index
    %5 = vector.load %arg5[%c0_4, %c0_5] : memref<1x128xf32, #tpu.memory_space<vmem>>, vector<1x128xf32>
    %6 = vector.broadcast %5 : vector<1x128xf32> to vector<16x128xf32>
    %7 = arith.addf %4, %6 : vector<16x128xf32>
    %c0_6 = arith.constant 0 : index
    %c0_7 = arith.constant 0 : index
    %c0_8 = arith.constant 0 : index
    %8 = vector.load %arg1[%c0_6, %c0_7, %c0_8] : memref<1x16x128xf32, #tpu.memory_space<vmem>>, vector<1x16x128xf32>
    %9 = vector.shape_cast %8 : vector<1x16x128xf32> to vector<16x128xf32>
    %c0_9 = arith.constant 0 : index
    %c0_10 = arith.constant 0 : index
    %c0_11 = arith.constant 0 : index
    %10 = vector.load %arg2[%c0_9, %c0_10, %c0_11] : memref<1x16x128xf32, #tpu.memory_space<vmem>>, vector<1x16x128xf32>
    %11 = vector.shape_cast %10 : vector<1x16x128xf32> to vector<16x128xf32>
    %12 = tpu.concatenate %9, %11, %7 in 1 : vector<16x128xf32>, vector<16x128xf32>, vector<16x128xf32> -> vector<16x384xf32>
    %c0_12 = arith.constant 0 : index
    %c0_13 = arith.constant 0 : index
    %13 = vector.load %arg6[%c0_12, %c0_13] : memref<384x128xf32, #tpu.memory_space<vmem>>, vector<384x128xf32>
    %cst = arith.constant dense<0.000000e+00> : vector<16x128xf32>
    %14 = tpu.matmul %12, %13, %cst {dimension_numbers = #tpu.dot_dimension_numbers<[1], [0], [0], [1], [0, 0, 1, 1], [], []>} : vector<16x384xf32>, vector<384x128xf32>, vector<16x128xf32> -> vector<16x128xf32>
    %c0_14 = arith.constant 0 : index
    %c0_15 = arith.constant 0 : index
    %15 = vector.load %arg7[%c0_14, %c0_15] : memref<1x128xf32, #tpu.memory_space<vmem>>, vector<1x128xf32>
    %16 = vector.broadcast %15 : vector<1x128xf32> to vector<16x128xf32>
    %17 = arith.addf %14, %16 : vector<16x128xf32>
    %cst_16 = arith.constant 0.000000e+00 : f32
    %18 = vector.broadcast %cst_16 : f32 to vector<16x128xf32>
    %19 = arith.maximumf %17, %18 : vector<16x128xf32>
    %c0_17 = arith.constant 0 : index
    %c0_18 = arith.constant 0 : index
    %c0_19 = arith.constant 0 : index
    %20 = vector.load %arg8[%c0_17, %c0_18, %c0_19] : memref<1x16x128xf32, #tpu.memory_space<vmem>>, vector<1x16x128xf32>
    %21 = vector.shape_cast %20 : vector<1x16x128xf32> to vector<16x128xf32>
    %22 = vector.shape_cast %19 : vector<16x128xf32> to vector<1x16x128xf32>
    tpu.vector_store %arg8[%c0_17, %c0_18, %c0_19], %22 {strides = array<i32>} : memref<1x16x128xf32, #tpu.memory_space<vmem>>, vector<1x16x128xf32>,
    return
  }
  func.func @transform_0(%arg0: i32) -> (i32, i32, i32) {
    %c0_i32 = arith.constant 0 : i32
    %c0_i32_0 = arith.constant 0 : i32
    %c0_i32_1 = arith.constant 0 : i32
    return %arg0, %c0_i32, %c0_i32_0 : i32, i32, i32
  }
  func.func @transform_1(%arg0: i32) -> (i32, i32, i32) {
    %c0_i32 = arith.constant 0 : i32
    %c0_i32_0 = arith.constant 0 : i32
    %c0_i32_1 = arith.constant 0 : i32
    return %arg0, %c0_i32, %c0_i32_0 : i32, i32, i32
  }
  func.func @transform_2(%arg0: i32) -> (i32, i32, i32) {
    %c0_i32 = arith.constant 0 : i32
    %c0_i32_0 = arith.constant 0 : i32
    %c0_i32_1 = arith.constant 0 : i32
    return %arg0, %c0_i32, %c0_i32_0 : i32, i32, i32
  }
  func.func @transform_3(%arg0: i32) -> (i32, i32) {
    %c0_i32 = arith.constant 0 : i32
    %c0_i32_0 = arith.constant 0 : i32
    %c0_i32_1 = arith.constant 0 : i32
    return %c0_i32, %c0_i32_0 : i32, i32
  }
  func.func @transform_4(%arg0: i32) -> (i32, i32) {
    %c0_i32 = arith.constant 0 : i32
    %c0_i32_0 = arith.constant 0 : i32
    %c0_i32_1 = arith.constant 0 : i32
    return %c0_i32, %c0_i32_0 : i32, i32
  }
  func.func @transform_5(%arg0: i32) -> (i32, i32) {
    %c0_i32 = arith.constant 0 : i32
    %c0_i32_0 = arith.constant 0 : i32
    %c0_i32_1 = arith.constant 0 : i32
    return %c0_i32, %c0_i32_0 : i32, i32
  }
  func.func @transform_6(%arg0: i32) -> (i32, i32) {
    %c0_i32 = arith.constant 0 : i32
    %c0_i32_0 = arith.constant 0 : i32
    %c0_i32_1 = arith.constant 0 : i32
    return %c0_i32, %c0_i32_0 : i32, i32
  }
  func.func @transform_7(%arg0: i32) -> (i32, i32, i32) {
    %c0_i32 = arith.constant 0 : i32
    %c0_i32_0 = arith.constant 0 : i32
    %c0_i32_1 = arith.constant 0 : i32
    return %arg0, %c0_i32, %c0_i32_0 : i32, i32, i32
  }
}

</mosaic_0001>

<bundles_post_ra>
// kernel: gnn_diff_forward.7
= control target key start
LH: loop header
LB: loop body
LE: loop exit
PB: predicated region body
PF: predicated region fallthrough
CT: control target
= control target key end

     0   :  { %12 = vsyncpa [#allocation3], 0  ;;  %s1182_s0 = inlined_call_operand.vmem [shape: f32[2,16,128], index: 0, kind: input, shape index: {}]   ;;  %s1183_s1 = inlined_call_operand.vmem [shape: f32[2,16,128], index: 1, kind: input, shape index: {}]   ;;  %s1184_s2 = inlined_call_operand.vmem [shape: f32[2,16,128], index: 2, kind: input, shape index: {}]   ;;  %s1185_s3 = inlined_call_operand.vmem [shape: f32[1,128], index: 3, kind: input, shape index: {}]   ;;  %s1186_s4 = inlined_call_operand.vmem [shape: f32[1,128], index: 4, kind: input, shape index: {}]   ;;  %s1187_s5 = inlined_call_operand.vmem [shape: f32[384,128], index: 5, kind: input, shape index: {}]   ;;  %s1188_s6 = inlined_call_operand.vmem [shape: f32[1,128], index: 6, kind: input, shape index: {}]   ;;  %s1189_s7 = inlined_call_operand.hbm [shape: f32[2,16,128], index: 7, kind: output, shape index: {}]  }
   0x1   :  { %14 = vsyncpa [#allocation3 + $0x1], 0  ;;  %s910_s24 = smov 0   ;;  %s912_s25 = smov 0  }
   0x2   :  { %s914_s26 = smov 0   ;;  %s916_s27 = smov 0  }
   0x3 LB: > { %s931_s28 = sadd.s32 4294967295, %s865_s27   ;;  %s650_s29 = sadd.s32 4294967294, %s865_s27   ;;  %s865_s27 = sphi %s916_s27, %s1195_s27   ;;  %s861_s26 = sphi %s914_s26, %s1194_s26   ;;  %s857_s25 = sphi %s912_s25, %s1193_s25   ;;  %s853_s24 = sphi %s910_s24, %s1192_s24  }
   0x4   : > { %s935_s30 = sadd.s32 1, %s865_s27   ;;  %s189_s8 = sadd.s32 1, %s861_s26 }
   0x5   : > { %s186_s9 = ssub.s32 %s865_s27, %s935_s30  ;;  %p199_p0 = scmp.ne.s32.totalorder %s861_s26, %s857_s25 }
   0x6   : > { %p187_p1 = scmp.eq.s32.totalorder %s186_s9, 0  ;;  %p200_p2 = scmp.eq.s32.totalorder %s931_s28, 1 }
   0x7   : > { %p205_p3 = scmp.ne.s32.totalorder %s857_s25, %s853_s24  ;;  %p206_p4 = scmp.eq.s32.totalorder %s650_s29, 1 }
   0x8   : > { %s946_s10 = scalar_select %p187_p1, %s861_s26, %s189_s8  }
   0x9   : > { %p948_p5 = por %p200_p2, %p199_p0  ;;  %p952_p6 = por %p206_p4, %p205_p3 }
   0xa   : > { %p653_p7 = scmp.ge.s32.totalorder %s865_s27, 1  ;;  %p260_p8 = scmp.lt.s32.totalorder %s865_s27, 3 }
   0xc   : > { %p261_p9 = pnand %p653_p7, %p260_p8 }
   0xd   : > { %p302_p10 = scmp.lt.s32.totalorder (!%p261_p9), %s931_s28, 1  ;;  %s672_s29 = sshll.u32 (!%p261_p9), %s931_s28, 8 }
   0xe   : > { %264 = sbr.rel (%p261_p9) target bundleno = 273 (0x111), region = 48  ;;  %s1140_s13 = scalar_lea.hbm (!%p261_p9), %s1189_s7, %s672_s29 }
  0x13   : > { %v372_v0 = vld [vmem:[%s1187_s5 + $0xf8] sm:$0xff]  ;;  %v371_v2 = vld [vmem:[%s1187_s5 + $0xf0] sm:$0xff]  ;;  %v370_v5 = vld [vmem:[%s1187_s5 + $0xe8] sm:$0xff]  ;;  %s303_s21 = scalar_select %p302_p10, %s931_s28, 1 }
  0x14   : > { %v356_v1 = vld [vmem:[%s1187_s5 + $0x78] sm:$0xff]  ;;  %673 = vmatprep.subr.mxu0 %v372_v0  ;;  %v355_v3 = vld [vmem:[%s1187_s5 + $0x70] sm:$0xff]  ;;  %v354_v7 = vld [vmem:[%s1187_s5 + $0x68] sm:$0xff]  ;;  %s867_s28 = smov [#allocation2]  }
  0x15   : > { %v388_v4 = vld [vmem:[%s1187_s5 + $0x178] sm:$0xff]  ;;  %674 = vmatpush3.msra.mxu0 %v356_v1  ;;  %v387_v6 = vld [vmem:[%s1187_s5 + $0x170] sm:$0xff]  ;;  %v386_v8 = vld [vmem:[%s1187_s5 + $0x168] sm:$0xff]  ;;  %s1055_s20 = sshll.u32 %s303_s21, 4  ;;  %s809_s14 = sshll.u32 %s867_s28, 4  ;;  %s810_s14 = int_to_ptr.vmem [resolvable:$false] %s809_s14 }
  0x16   : > { %729 = vmatprep.subr.mxu1 %v388_v4  ;;  %675 = vmatprep.subr.mxu0 %v371_v2  ;;  %v369_v9 = vld [vmem:[%s1187_s5 + $0xe0] sm:$0xff]  ;;  %v368_v12 = vld [vmem:[%s1187_s5 + $0xd8] sm:$0xff]  ;;  %v367_v15 = vld [vmem:[%s1187_s5 + $0xd0] sm:$0xff]  ;;  %s316_s19 = scalar_lea.vmem %s1184_s2, %s1055_s20  ;;  %s1089_s15 = scalar_lea.vmem %s1183_s1, %s1055_s20 }
  0x17   : > { %730 = vmatpush3.msra.mxu1 %v388_v4  ;;  %676 = vmatpush3.msra.mxu0 %v355_v3  ;;  %v353_v10 = vld [vmem:[%s1187_s5 + $0x60] sm:$0xff]  ;;  %v352_v13 = vld [vmem:[%s1187_s5 + $0x58] sm:$0xff]  ;;  %v351_v16 = vld [vmem:[%s1187_s5 + $0x50] sm:$0xff]  ;;  %s306_s22 = scalar_lea.vmem %s1182_s0, %s1055_s20  ;;  %s811_s16 = scalar_lea.vmem %s810_s14, 512 }
  0x18   : > { %731 = vmatprep.subr.mxu1 %v387_v6  ;;  %677 = vmatprep.subr.mxu0 %v370_v5  ;;  %v385_v11 = vld [vmem:[%s1187_s5 + $0x160] sm:$0xff]  ;;  %v384_v14 = vld [vmem:[%s1187_s5 + $0x158] sm:$0xff]  ;;  %v383_v17 = vld [vmem:[%s1187_s5 + $0x150] sm:$0xff] }
  0x19   : > { %732 = vmatpush3.msra.mxu1 %v387_v6  ;;  %678 = vmatpush3.msra.mxu0 %v354_v7  ;;  %v366_v18 = vld [vmem:[%s1187_s5 + $0xc8] sm:$0xff]  ;;  %v365_v21 = vld [vmem:[%s1187_s5 + $0xc0] sm:$0xff]  ;;  %v364_v24 = vld [vmem:[%s1187_s5 + $0xb8] sm:$0xff] }
  0x1a   : > { %733 = vmatprep.subr.mxu1 %v386_v8  ;;  %679 = vmatprep.subr.mxu0 %v369_v9  ;;  %v350_v19 = vld [vmem:[%s1187_s5 + $0x48] sm:$0xff]  ;;  %v349_v22 = vld [vmem:[%s1187_s5 + $0x40] sm:$0xff]  ;;  %v348_v25 = vld [vmem:[%s1187_s5 + $0x38] sm:$0xff] }
  0x1b   : > { %734 = vmatpush3.msra.mxu1 %v386_v8  ;;  %680 = vmatpush3.msra.mxu0 %v353_v10  ;;  %v382_v20 = vld [vmem:[%s1187_s5 + $0x148] sm:$0xff]  ;;  %v381_v23 = vld [vmem:[%s1187_s5 + $0x140] sm:$0xff]  ;;  %v380_v26 = vld [vmem:[%s1187_s5 + $0x138] sm:$0xff] }
  0x1c   : > { %735 = vmatprep.subr.mxu1 %v385_v11  ;;  %681 = vmatprep.subr.mxu0 %v368_v12  ;;  %v363_v27 = vld [vmem:[%s1187_s5 + $0xb0] sm:$0xff]  ;;  %v362_v30 = vld [vmem:[%s1187_s5 + $0xa8] sm:$0xff]  ;;  %v361_v33 = vld [vmem:[%s1187_s5 + $0xa0] sm:$0xff] }
  0x1d   : > { %736 = vmatpush3.msra.mxu1 %v385_v11  ;;  %682 = vmatpush3.msra.mxu0 %v352_v13  ;;  %v347_v28 = vld [vmem:[%s1187_s5 + $0x30] sm:$0xff]  ;;  %v346_v31 = vld [vmem:[%s1187_s5 + $0x28] sm:$0xff]  ;;  %v345_v34 = vld [vmem:[%s1187_s5 + $0x20] sm:$0xff] }
  0x1e   : > { %737 = vmatprep.subr.mxu1 %v384_v14  ;;  %683 = vmatprep.subr.mxu0 %v367_v15  ;;  %v379_v29 = vld [vmem:[%s1187_s5 + $0x130] sm:$0xff]  ;;  %v378_v32 = vld [vmem:[%s1187_s5 + $0x128] sm:$0xff]  ;;  %v377_v35 = vld [vmem:[%s1187_s5 + $0x120] sm:$0xff] }
  0x1f   : > { %738 = vmatpush3.msra.mxu1 %v384_v14  ;;  %684 = vmatpush3.msra.mxu0 %v351_v16  ;;  %v360_v36 = vld [vmem:[%s1187_s5 + $0x98] sm:$0xff]  ;;  %v359_v39 = vld [vmem:[%s1187_s5 + $0x90] sm:$0xff]  ;;  %v317_v40 = vld [vmem:[%s316_s19] sm:$0xff] }
  0x20   : > { %739 = vmatprep.subr.mxu1 %v383_v17  ;;  %685 = vmatprep.subr.mxu0 %v366_v18  ;;  %v344_v37 = vld [vmem:[%s1187_s5 + $0x18] sm:$0xff]  ;;  %v661_v41 = vld [vmem:[%s1185_s3] ss:$0 sm:$0xff]  ;;  %v343_v42 = vld [vmem:[%s1187_s5 + $0x10] sm:$0xff] }
  0x21   : > { %740 = vmatpush3.msra.mxu1 %v383_v17  ;;  %686 = vmatpush3.msra.mxu0 %v350_v19  ;;  %v376_v38 = vld [vmem:[%s1187_s5 + $0x118] sm:$0xff]  ;;  %v375_v43 = vld [vmem:[%s1187_s5 + $0x110] sm:$0xff]  ;;  %v318_v44 = vld [vmem:[%s316_s19 + $0x8] sm:$0xff]  ;;  %v326_v48 = vmul.f32 %v661_v41, %v317_v40 }
  0x22   : > { %741 = vmatprep.subr.mxu1 %v382_v20  ;;  %687 = vmatprep.subr.mxu0 %v365_v21  ;;  %v358_v45 = vld [vmem:[%s1187_s5 + $0x88] sm:$0xff]  ;;  %v339_v46 = vld [vmem:[%s1089_s15] sm:$0xff]  ;;  %v327_v51 = vmul.f32 %v661_v41, %v318_v44 }
  0x23   : > { %742 = vmatpush3.msra.mxu1 %v382_v20  ;;  %688 = vmatpush3.msra.mxu0 %v349_v22  ;;  %v342_v47 = vld [vmem:[%s1187_s5 + $0x8] sm:$0xff]  ;;  %v357_v49 = vld [vmem:[%s1187_s5 + $0x80] sm:$0xff] }
  0x24   : > { %743 = vmatprep.subr.mxu1 %v381_v23  ;;  %689 = vmatprep.subr.mxu0 %v364_v24  ;;  %v374_v50 = vld [vmem:[%s1187_s5 + $0x108] sm:$0xff]  ;;  %v662_v52 = vld [vmem:[%s1186_s4] ss:$0 sm:$0xff] }
  0x25   : > { %744 = vmatpush3.msra.mxu1 %v381_v23  ;;  %690 = vmatpush3.msra.mxu0 %v348_v25  ;;  %v341_v53 = vld [vmem:[%s1187_s5] sm:$0xff]  ;;  %v340_v56 = vld [vmem:[%s1089_s15 + $0x8] sm:$0xff]  ;;  %v335_v57 = vadd.f32 %v662_v52, %v326_v48  ;;  %v336_v58 = vadd.f32 %v662_v52, %v327_v51  ;;  %s299_s15 = sand.u32 1, %s857_s25  }
  0x26   : > { %745 = vmatprep.subr.mxu1 %v380_v26  ;;  %691 = vmatprep.subr.mxu0 %v363_v27  ;;  %v337_v54 = vld [vmem:[%s306_s22] sm:$0xff]  ;;  %v338_v59 = vld [vmem:[%s306_s22 + $0x8] sm:$0xff]  ;;  %s654_s19 = sshll.u32 %s299_s15, 4  ;;  %s1142_s21 = scalar_lea.sflag [#allocation3], %s299_s15 }
  0x27   : > { %746 = vmatpush3.msra.mxu1 %v380_v26  ;;  %692 = vmatpush3.msra.mxu0 %v347_v28  ;;  %v373_v55 = vld [vmem:[%s1187_s5 + $0x100] sm:$0xff]  ;;  %s301_s22 = scalar_lea.vmem [#allocation2], %s654_s19 }
  0x28   : > { %747 = vmatprep.subr.mxu1 %v379_v29  ;;  %693 = vmatprep.subr.mxu0 %v362_v30  ;;  %v663_v62 = vld [vmem:[%s1188_s6] ss:$0 sm:$0xff]  ;;  %s564_s23 = sshll.u32 %s301_s22, 4  ;;  %s1135_s23 = int_to_ptr.vmem [resolvable:$true] %s564_s23 }
  0x29   : > { %748 = vmatpush3.msra.mxu1 %v379_v29  ;;  %694 = vmatpush3.msra.mxu0 %v346_v31  ;;  %s805_s20 = scalar_lea.vmem %s1135_s23, 256  ;;  %p812_p0 = scmp.lt.s32.totalorder %s1135_s23, %s810_s14 }
  0x2a   : > { %749 = vmatprep.subr.mxu1 %v378_v32  ;;  %695 = vmatprep.subr.mxu0 %v361_v33  ;;  %p806_p11 = scmp.ne.s32.totalorder %s1135_s23, %s805_s20  ;;  %p813_p1 = scmp.lt.s32.totalorder %s811_s16, %s805_s20 }
  0x2b   : > { %750 = vmatpush3.msra.mxu1 %v378_v32  ;;  %696 = vmatpush3.msra.mxu0 %v345_v34 }
  0x2c   : > { %751 = vmatprep.subr.mxu1 %v377_v35  ;;  %697 = vmatprep.subr.mxu0 %v360_v36  ;;  %p807_p12 = pnand %p806_p11, %p948_p5  ;;  %p814_p2 = por %p813_p1, %p812_p0 }
  0x2d   : > { %752 = vmatpush3.msra.mxu1 %v377_v35  ;;  %698 = vmatpush3.msra.mxu0 %v344_v37 }
  0x2e   : > { %753 = vmatprep.subr.mxu1 %v376_v38  ;;  %699 = vmatprep.subr.mxu0 %v359_v39  ;;  %p808_p13 = pneg %p807_p12 }
  0x2f   : > { %754 = vmatpush3.msra.mxu1 %v376_v38  ;;  %700 = vmatpush3.msra.mxu0 %v343_v42 }
  0x30   : > { %755 = vmatprep.subr.mxu1 %v375_v43  ;;  %701 = vmatprep.subr.mxu0 %v358_v45  ;;  %p815_p3 = pnand %p814_p2, %p808_p13 }
  0x31   : > { %460 = vmatprep.mubr.f32.mxu0 %v339_v46  ;;  %702 = vmatpush3.msra.mxu0 %v342_v47 }
  0x32   : > { %756 = vmatpush3.msra.mxu1 %v375_v43  ;;  %703 = vmatprep.subr.mxu0 %v357_v49 }
  0x33   : > { %757 = vmatprep.subr.mxu1 %v374_v50  ;;  %704 = vmatpush3.msra.mxu0 %v341_v53 }
  0x34   : > { %758 = vmatpush3.msra.mxu1 %v374_v50  ;;  %461 = vmatmul.mubr.f32.vlgmr.msra.gmra.mxu0 %v337_v54 }
  0x35   : > { %759 = vmatprep.subr.mxu1 %v373_v55  ;;  %465 = vmatprep.mubr.f32.mxu0 %v340_v56 }
  0x36   : > { %760 = vmatpush3.msra.mxu1 %v373_v55  ;;  %761 = vmatprep.mubr.f32.mxu1 %v335_v57 }
  0x37   : > { %762 = vmatmul.mubr.f32.vlgmr.msra.gmra.mxu1 %v336_v58 }
  0x38   : > { %466 = vmatmul.mubr.f32.gmra.mxu0 %v338_v59 }
  0xf4   : > { %v705_v60 = vpop.f32.mrf.mxu0 }
  0xf6   : > { %v706_v61 = vpop.f32.mrf.mxu0 }
  0xf7   : > { %v707_v63 = vadd.f32 %v706_v61, %v705_v60  ;;  %v763_v0 = vpop.f32.mrf.mxu1 }
  0xf8   : > { %v708_v1 = vpop.f32.mrf.mxu0 }
  0xf9   : > { %v463_v2 = vadd.f32 %v707_v63, %v663_v62  ;;  %v537_v3 = vpop.f32.mrf.mxu1 }
  0xfa   : > { %v709_v4 = vpop.f32.mrf.mxu0 }
  0xfb   : > { %v710_v5 = vadd.f32 %v709_v4, %v708_v1  ;;  %v538_v6 = vadd.f32 %v537_v3, %v463_v2 }
  0xfd   : > { %v468_v7 = vadd.f32 %v710_v5, %v663_v62  ;;  %v546_v8 = vmax.f32 %v538_v6, 0.0 }
  0xff   : > { %v543_v9 = vadd.f32 %v763_v0, %v468_v7  ;;  %548 = vst [vmem:[%s301_s22] sm:$0xff] %v546_v8 }
 0x101   : > { %v547_v10 = vmax.f32 %v543_v9, 0.0 }
 0x103   : > { %549 = vst [vmem:[%s301_s22 + $0x8] sm:$0xff] %v547_v10 }
 0x104   : > { %818 = shalt.err (!%p815_p3)
}
 0x105   : > { %s819_s17 = scalar_lea.hbm %s1140_s13, 256  ;;  %s823_s19 = scalar_lea.hbm %s1189_s7, 512 }
 0x106   : > { %p820_p4 = scmp.ne.s32.totalorder %s1140_s13, %s819_s17  ;;  %p824_p9 = scmp.lt.s32.totalorder %s1140_s13, %s1189_s7 }
 0x107   : > { %p825_p10 = scmp.lt.s32.totalorder %s823_s19, %s819_s17 }
 0x108   : > { %p821_p7 = pnand %p820_p4, %p948_p5 }
 0x109   : > { %p826_p11 = por %p825_p10, %p824_p9 }
 0x10a   : > { %p822_p8 = pneg %p821_p7 }
 0x10c   : > { %p827_p12 = pnand %p826_p11, %p822_p8 }
 0x10e   : > { %830 = shalt.err (!%p827_p12)
}
 0x10f   : > { %s868_s8 = smov 128   ;;  %s869_s9 = smov 8  }
 0x110   : > { %764 = dma.vmem_to_hbm [thread:$0]  (%p948_p5), %s1135_s23, 256, %s1140_s13, %s1142_s21, %s868_s8, %s868_s8, %s869_s9  }
 0x111 PF: > { %p770_p13 = scmp.ge.s32.totalorder %s865_s27, 2  ;;  %s579_s20 = sand.u32 1, %s853_s24  }
 0x112   : > { %s580_s28 = scalar_lea.sflag [#allocation3], %s579_s20 }
 0x113   : > { %p767_p0 = pnand %p770_p13, %p952_p6 }
 0x115   : > { %p768_p1 = pneg %p767_p0 }
 0x117   : > { %848 = dma.done.wait (%p768_p1), %s580_s28, 256  }
 0x118   : > { %850 = vsyncadd (%p768_p1), %s580_s28, 4294967040  ;;  %p17_p2 = scmp.ge.s32.totalorder %s935_s30, 4   ;;  %s1192_s24 = smov %s857_s25 }
 0x119   : > { %s1193_s25 = smov %s861_s26  ;;  %s1194_s26 = smov %s946_s10 }
 0x11a   : > { %s1195_s27 = smov %s935_s30  ;;  %19 = sbr.rel (!%p17_p2) target bundleno = 3 (0x3), region = 89 }
 0x11f   :  { %585 = vsyncpa [#allocation3], 1 }
 0x120   :  { %587 = vsyncpa [#allocation3 + $0x1], 1 }

// kernel: gnn_diff_forward.5
= control target key start
LH: loop header
LB: loop body
LE: loop exit
PB: predicated region body
PF: predicated region fallthrough
CT: control target
= control target key end

     0   :  { %s1034_s30 = smov 0   ;;  %s1189_s0 = inlined_call_operand.vmem [shape: f32[2,16,128], index: 0, kind: input, shape index: {}]   ;;  %s1190_s1 = inlined_call_operand.vmem [shape: f32[1,128], index: 1, kind: input, shape index: {}]   ;;  %s1191_s2 = inlined_call_operand.vmem [shape: f32[1,128], index: 2, kind: input, shape index: {}]   ;;  %s1192_s3 = inlined_call_operand.vmem [shape: f32[2,16,16], index: 3, kind: input, shape index: {}]   ;;  %s1193_s4 = inlined_call_operand.vmem [shape: f32[128,128], index: 4, kind: input, shape index: {}]   ;;  %s1194_s5 = inlined_call_operand.vmem [shape: f32[1,128], index: 5, kind: input, shape index: {}]   ;;  %s1195_s6 = inlined_call_operand.vmem [shape: f32[128,128], index: 6, kind: input, shape index: {}]   ;;  %s1196_s7 = inlined_call_operand.vmem [shape: f32[2,16,128], index: 7, kind: output, shape index: {0}]   ;;  %s1197_s8 = inlined_call_operand.vmem [shape: f32[2,16,128], index: 8, kind: output, shape index: {1}]   ;;  %s1198_s9 = inlined_call_operand.vmem [shape: f32[2,2,128], index: 9, kind: output, shape index: {2}]  }
   0x1 LB: > { %s826_s10 = sadd.s32 4294967295, %s982_s30   ;;  %p830_p0 = scmp.ge.s32.totalorder %s982_s30, 1  ;;  %s982_s30 = sphi %s1034_s30, %s20_s30  }
   0x2   : > { %p302_p1 = scmp.lt.s32.totalorder %s982_s30, 3 }
   0x4   : > { %p303_p2 = pnand %p830_p0, %p302_p1 }
   0x5   : > { %p352_p3 = scmp.lt.s32.totalorder (!%p303_p2), %s826_s10, 1 }
   0x6   : > { %306 = sbr.rel (%p303_p2) target bundleno = 437 (0x1b5), region = 48 }
   0xb   : > { %v432_v0 = vld [vmem:[%s1195_s6 + $0x78] sm:$0xff]  ;;  %v431_v1 = vld [vmem:[%s1195_s6 + $0x70] sm:$0xff]  ;;  %s1200_s10 = smov (!%p352_p3, %s826_s10), 1  ;;  %v430_v2 = vld [vmem:[%s1195_s6 + $0x68] sm:$0xff]  ;;  %vm433_vm0 = vcmask 130048  }
   0xc   : > { %898 = vmatprep.subr.mxu1 %v432_v0  ;;  %s1054_s17 = sshll.u32 %s1200_s10, 4  ;;  %v840_v3 = vld [vmem:[%s1190_s1] ss:$0 sm:$0xff]  ;;  %v428_v11 = vld [vmem:[%s1195_s6 + $0x58] sm:$0xff]  ;;  %v427_v14 = vld [vmem:[%s1195_s6 + $0x50] sm:$0xff] }
   0xd   : > { %899 = vmatpush3.msra.mxu1 %v432_v0  ;;  %s356_s22 = scalar_lea.vmem %s1189_s0, %s1054_s17  ;;  %v429_v4 = vld [vmem:[%s1195_s6 + $0x60] sm:$0xff]  ;;  %s361_s29 = scalar_lea.vmem %s1192_s3, %s1054_s17  ;;  %v426_v15 = vld [vmem:[%s1195_s6 + $0x48] sm:$0xff]  ;;  %v415_v17 = vld [vmem:[%s1193_s4 + $0x78] sm:$0xff] }
   0xe   : > { %900 = vmatprep.subr.mxu1 %v431_v1  ;;  %v377_v5 = vld [vmem:[%s356_s22 + $0x8] sm:$0xff]  ;;  %v841_v6 = vld [vmem:[%s1191_s2] ss:$0 sm:$0xff]  ;;  %s366_s15 = scalar_lea.vmem %s1196_s7, %s1054_s17  ;;  %v414_v18 = vld [vmem:[%s1193_s4 + $0x70] sm:$0xff]  ;;  %s371_s21 = scalar_lea.vmem %s1197_s8, %s1054_s17 }
   0xf   : > { %901 = vmatpush3.msra.mxu1 %v431_v1  ;;  %v376_v7 = vld [vmem:[%s356_s22] sm:$0xff]  ;;  %v386_v8 = vmul.f32 %v840_v3, %v377_v5  ;;  %v399_v16 = vld [vmem:[%s361_s29 + $0x8] sm:$0xff]  ;;  %v424_v21 = vld [vmem:[%s1195_s6 + $0x38] sm:$0xff]  ;;  %s839_s22 = sshll.u32 %s1200_s10, 1 }
  0x10   : > { %902 = vmatprep.subr.mxu1 %v430_v2  ;;  %v385_v9 = vmul.f32 %v840_v3, %v376_v7  ;;  %v398_v10 = vld [vmem:[%s361_s29] sm:$0xff]  ;;  %v413_v20 = vld [vmem:[%s1193_s4 + $0x68] sm:$0xff]  ;;  %v423_v23 = vld [vmem:[%s1195_s6 + $0x30] sm:$0xff]  ;;  %s375_s24 = scalar_lea.vmem %s1198_s9, %s839_s22 }
  0x11   : > { %903 = vmatpush3.msra.mxu1 %v430_v2  ;;  %895 = vmatprep.mubr.msk.f32.mxu0 %vm433_vm0, %v398_v10  ;;  %v1081_v12 = vadd.f32 %v841_v6, %v386_v8  ;;  %v425_v19 = vld [vmem:[%s1195_s6 + $0x40] sm:$0xff]  ;;  %v411_v24 = vld [vmem:[%s1193_s4 + $0x58] sm:$0xff]  ;;  %v422_v25 = vld [vmem:[%s1195_s6 + $0x28] sm:$0xff] }
  0x12   : > { %904 = vmatprep.subr.mxu1 %v429_v4  ;;  %v1083_v13 = vadd.f32 %v841_v6, %v385_v9  ;;  %v412_v22 = vld [vmem:[%s1193_s4 + $0x60] sm:$0xff]  ;;  %v410_v26 = vld [vmem:[%s1193_s4 + $0x50] sm:$0xff]  ;;  %v409_v28 = vld [vmem:[%s1193_s4 + $0x48] sm:$0xff] }
  0x13   : > { %905 = vmatpush3.msra.mxu1 %v429_v4  ;;  %397 = vst [vmem:[%s366_s15 + $0x8] sm:$0xff] %v1081_v12  ;;  %891 = vmatprep.subr.mxu0 %v1081_v12  ;;  %v421_v27 = vld [vmem:[%s1195_s6 + $0x20] sm:$0xff]  ;;  %v420_v29 = vld [vmem:[%s1195_s6 + $0x18] sm:$0xff]  ;;  %v419_v31 = vld [vmem:[%s1195_s6 + $0x10] sm:$0xff] }
  0x14   : > { %906 = vmatprep.subr.mxu1 %v428_v11  ;;  %396 = vst [vmem:[%s366_s15] sm:$0xff] %v1083_v13  ;;  %892 = vmatpush3.msra.mxu0 %v1081_v12  ;;  %v408_v30 = vld [vmem:[%s1193_s4 + $0x40] sm:$0xff]  ;;  %v407_v32 = vld [vmem:[%s1193_s4 + $0x38] sm:$0xff]  ;;  %v418_v33 = vld [vmem:[%s1195_s6 + $0x8] sm:$0xff] }
  0x15   : > { %907 = vmatpush3.msra.mxu1 %v428_v11  ;;  %893 = vmatprep.subr.mxu0 %v1083_v13  ;;  %v406_v34 = vld [vmem:[%s1193_s4 + $0x30] sm:$0xff]  ;;  %v405_v35 = vld [vmem:[%s1193_s4 + $0x28] sm:$0xff]  ;;  %v404_v36 = vld [vmem:[%s1193_s4 + $0x20] sm:$0xff] }
  0x16   : > { %908 = vmatprep.subr.mxu1 %v427_v14  ;;  %894 = vmatpush3.msra.mxu0 %v1083_v13  ;;  %v403_v37 = vld [vmem:[%s1193_s4 + $0x18] sm:$0xff]  ;;  %v402_v38 = vld [vmem:[%s1193_s4 + $0x10] sm:$0xff]  ;;  %v417_v39 = vld [vmem:[%s1195_s6] sm:$0xff] }
  0x17   : > { %909 = vmatpush3.msra.mxu1 %v427_v14  ;;  %896 = vmatmul.mubr.msk.f32.vlgmr.msra.gmra.mxu0 %vm433_vm0, %v399_v16  ;;  %v401_v40 = vld [vmem:[%s1193_s4 + $0x8] sm:$0xff]  ;;  %v400_v41 = vld [vmem:[%s1193_s4] sm:$0xff] }
  0x18   : > { %910 = vmatprep.subr.mxu1 %v426_v15  ;;  %933 = vmatprep.subr.mxu0 %v415_v17  ;;  %v844_v45 = vld [vmem:[%s1194_s5] ss:$0 sm:$0xff] }
  0x19   : > { %934 = vmatpush3.msra.mxu0 %v415_v17  ;;  %911 = vmatpush3.msra.mxu1 %v426_v15 }
  0x1a   : > { %935 = vmatprep.subr.mxu0 %v414_v18  ;;  %912 = vmatprep.subr.mxu1 %v425_v19 }
  0x1b   : > { %936 = vmatpush3.msra.mxu0 %v414_v18  ;;  %913 = vmatpush3.msra.mxu1 %v425_v19 }
  0x1c   : > { %937 = vmatprep.subr.mxu0 %v413_v20  ;;  %914 = vmatprep.subr.mxu1 %v424_v21 }
  0x1d   : > { %938 = vmatpush3.msra.mxu0 %v413_v20  ;;  %915 = vmatpush3.msra.mxu1 %v424_v21 }
  0x1e   : > { %939 = vmatprep.subr.mxu0 %v412_v22  ;;  %916 = vmatprep.subr.mxu1 %v423_v23 }
  0x1f   : > { %940 = vmatpush3.msra.mxu0 %v412_v22  ;;  %917 = vmatpush3.msra.mxu1 %v423_v23 }
  0x20   : > { %941 = vmatprep.subr.mxu0 %v411_v24  ;;  %918 = vmatprep.subr.mxu1 %v422_v25 }
  0x21   : > { %942 = vmatpush3.msra.mxu0 %v411_v24  ;;  %919 = vmatpush3.msra.mxu1 %v422_v25 }
  0x22   : > { %943 = vmatprep.subr.mxu0 %v410_v26  ;;  %920 = vmatprep.subr.mxu1 %v421_v27 }
  0x23   : > { %944 = vmatpush3.msra.mxu0 %v410_v26  ;;  %921 = vmatpush3.msra.mxu1 %v421_v27 }
  0x24   : > { %945 = vmatprep.subr.mxu0 %v409_v28  ;;  %922 = vmatprep.subr.mxu1 %v420_v29 }
  0x25   : > { %946 = vmatpush3.msra.mxu0 %v409_v28  ;;  %923 = vmatpush3.msra.mxu1 %v420_v29 }
  0x26   : > { %947 = vmatprep.subr.mxu0 %v408_v30  ;;  %924 = vmatprep.subr.mxu1 %v419_v31 }
  0x27   : > { %948 = vmatpush3.msra.mxu0 %v408_v30  ;;  %925 = vmatpush3.msra.mxu1 %v419_v31 }
  0x28   : > { %949 = vmatprep.subr.mxu0 %v407_v32  ;;  %926 = vmatprep.subr.mxu1 %v418_v33 }
  0x29   : > { %950 = vmatpush3.msra.mxu0 %v407_v32  ;;  %927 = vmatpush3.msra.mxu1 %v418_v33 }
  0x2a   : > { %951 = vmatprep.subr.mxu0 %v406_v34  ;;  %930 = vmatprep.mubr.f32.mxu1 %v1083_v13 }
  0x2b   : > { %952 = vmatpush3.msra.mxu0 %v406_v34  ;;  %928 = vmatprep.subr.mxu1 %v417_v39 }
  0x2c   : > { %953 = vmatprep.subr.mxu0 %v405_v35  ;;  %929 = vmatpush3.msra.mxu1 %v417_v39 }
  0x2d   : > { %954 = vmatpush3.msra.mxu0 %v405_v35  ;;  %931 = vmatmul.mubr.f32.vlgmr.msra.gmra.mxu1 %v1081_v12 }
  0x2e   : > { %955 = vmatprep.subr.mxu0 %v404_v36 }
  0x2f   : > { %956 = vmatpush3.msra.mxu0 %v404_v36 }
  0x30   : > { %957 = vmatprep.subr.mxu0 %v403_v37 }
  0x31   : > { %958 = vmatpush3.msra.mxu0 %v403_v37 }
  0x32   : > { %959 = vmatprep.subr.mxu0 %v402_v38 }
  0x33   : > { %960 = vmatpush3.msra.mxu0 %v402_v38 }
  0x34   : > { %961 = vmatprep.subr.mxu0 %v401_v40 }
  0x35   : > { %962 = vmatpush3.msra.mxu0 %v401_v40 }
  0x36   : > { %963 = vmatprep.subr.mxu0 %v400_v41 }
  0x37   : > { %964 = vmatpush3.msra.mxu0 %v400_v41 }
  0xd7   : > { %v897_v42 = vpop.f32.mrf.mxu0 }
  0xd9   : > { %v506_v43 = vpop.f32.mrf.mxu0 }
  0xda   : > { %965 = vmatprep.mubr.f32.mxu0 %v506_v43 }
  0xdb   : > { %966 = vmatmul.mubr.f32.vlgmr.msra.gmra.mxu0 %v897_v42 }
  0xed   : > { %v932_v44 = vpop.f32.mrf.mxu1 }
  0xef   : > { %v581_v48 = vpop.f32.mrf.mxu1 }
 0x19b   : > { %v967_v46 = vpop.f32.mrf.mxu0 }
 0x19c   : > { %v662_v47 = vadd.f32 %v967_v46, %v932_v44 }
 0x19d   : > { %v656_v49 = vpop.f32.mrf.mxu0 }
 0x19e   : > { %v672_v50 = vadd.f32 %v844_v45, %v662_v47  ;;  %v657_v51 = vadd.f32 %v656_v49, %v581_v48 }
 0x1a0   : > { %v674_v52 = vmax.f32 %v672_v50, 0.0  ;;  %v671_v53 = vadd.f32 %v844_v45, %v657_v51 }
 0x1a2   : > { %676 = vst [vmem:[%s371_s21 + $0x8] sm:$0xff] %v674_v52  ;;  %v673_v54 = vmax.f32 %v671_v53, 0.0  ;;  %v686_v55 = vmul.f32 %v674_v52, %v674_v52 }
 0x1a4   : > { %675 = vst [vmem:[%s371_s21] sm:$0xff] %v673_v54  ;;  %v677_v56 = vadd.f32 %v674_v52, %v673_v54  ;;  %v685_v57 = vmul.f32 %v673_v54, %v673_v54 }
 0x1a6   : > { %v678_v58 = vrot.slane %v677_v56, 4  ;;  %v687_v59 = vadd.f32 %v686_v55, %v685_v57 }
 0x1a8   : > { %v679_v60 = vadd.f32 %v678_v58, %v677_v56  ;;  %v688_v61 = vrot.slane %v687_v59, 4 }
 0x1aa   : > { %v680_v62 = vrot.slane %v679_v60, 2  ;;  %v689_v63 = vadd.f32 %v688_v61, %v687_v59 }
 0x1ac   : > { %v681_v0 = vadd.f32 %v680_v62, %v679_v60  ;;  %v690_v1 = vrot.slane %v689_v63, 2 }
 0x1ae   : > { %v682_v2 = vrot.slane %v681_v0, 1  ;;  %v691_v3 = vadd.f32 %v690_v1, %v689_v63 }
 0x1b0   : > { %v683_v4 = vadd.f32 %v682_v2, %v681_v0  ;;  %v692_v5 = vrot.slane %v691_v3, 1 }
 0x1b2   : > { %684 = vst [vmem:[%s375_s24] sm:$0x1] %v683_v4  ;;  %v693_v6 = vadd.f32 %v692_v5, %v691_v3 }
 0x1b4   : > { %694 = vst [vmem:[%s375_s24 + $0x1] sm:$0x1] %v693_v6 }
 0x1b5 PF: > { %s20_s30 = sadd.s32 1, %s982_s30  }
 0x1b6   : > { %p17_p4 = scmp.ge.s32.totalorder %s20_s30, 4  }
 0x1b8   :  { %19 = sbr.rel (!%p17_p4) target bundleno = 1 (0x1), region = 105 }

// kernel: gnn_diff_forward.4
= control target key start
LH: loop header
LB: loop body
LE: loop exit
PB: predicated region body
PF: predicated region fallthrough
CT: control target
= control target key end

     0   :  { %s966_s24 = smov 0   ;;  %s1120_s0 = inlined_call_operand.vmem [shape: f32[2,16,128], index: 0, kind: input, shape index: {}]   ;;  %s1121_s1 = inlined_call_operand.vmem [shape: f32[2,16,16], index: 1, kind: input, shape index: {}]   ;;  %s1122_s2 = inlined_call_operand.vmem [shape: f32[128,128], index: 2, kind: input, shape index: {}]   ;;  %s1123_s3 = inlined_call_operand.vmem [shape: f32[1,128], index: 3, kind: input, shape index: {}]   ;;  %s1124_s4 = inlined_call_operand.vmem [shape: f32[128,128], index: 4, kind: input, shape index: {}]   ;;  %s1125_s5 = inlined_call_operand.vmem [shape: f32[2,16,16], index: 5, kind: output, shape index: {0}]   ;;  %s1126_s6 = inlined_call_operand.vmem [shape: f32[2,16,128], index: 6, kind: output, shape index: {1}]   ;;  %s1127_s7 = inlined_call_operand.vmem [shape: f32[2,2,128], index: 7, kind: output, shape index: {2}]  }
   0x1 LB: > { %s766_s25 = sadd.s32 4294967295, %s924_s24   ;;  %p770_p0 = scmp.ge.s32.totalorder %s924_s24, 1  ;;  %s924_s24 = sphi %s966_s24, %s18_s24  }
   0x2   : > { %p252_p1 = scmp.lt.s32.totalorder %s924_s24, 3 }
   0x4   : > { %p253_p2 = pnand %p770_p0, %p252_p1 }
   0x5   : > { %p298_p3 = scmp.lt.s32.totalorder (!%p253_p2), %s766_s25, 1 }
   0x6   : > { %256 = sbr.rel (%p253_p2) target bundleno = 590 (0x24e), region = 40 }
   0xb   : > { %s1129_s25 = smov (!%p298_p3, %s766_s25), 1  ;;  %vm324_vm0 = vcmask 130048   ;;  %v373_v6 = vld [vmem:[%s1124_s4 + $0x78] sm:$0xff]  ;;  %v372_v7 = vld [vmem:[%s1124_s4 + $0x70] sm:$0xff]  ;;  %v371_v9 = vld [vmem:[%s1124_s4 + $0x68] sm:$0xff] }
   0xc   : > { %s977_s26 = sshll.u32 %s1129_s25, 4  ;;  %v356_v8 = vld [vmem:[%s1122_s2 + $0x78] sm:$0xff]  ;;  %836 = vmatprep.subr.mxu1 %v373_v6  ;;  %v370_v10 = vld [vmem:[%s1124_s4 + $0x60] sm:$0xff]  ;;  %v368_v12 = vld [vmem:[%s1124_s4 + $0x50] sm:$0xff]  ;;  %s779_s22 = sshll.u32 %s1129_s25, 1 }
   0xd   : > { %s307_s29 = scalar_lea.vmem %s1121_s1, %s977_s26  ;;  %s302_s9 = scalar_lea.vmem %s1120_s0, %s977_s26  ;;  %837 = vmatpush3.msra.mxu1 %v373_v6  ;;  %v369_v11 = vld [vmem:[%s1124_s4 + $0x58] sm:$0xff]  ;;  %v367_v13 = vld [vmem:[%s1124_s4 + $0x48] sm:$0xff]  ;;  %v366_v14 = vld [vmem:[%s1124_s4 + $0x40] sm:$0xff] }
   0xe   : > { %v983_v0 = vld [vmem:[%s307_s29] sm:$0xff]  ;;  %v985_v1 = vld [vmem:[%s307_s29 + $0x8] sm:$0xff]  ;;  %838 = vmatprep.subr.mxu1 %v372_v7  ;;  %v365_v15 = vld [vmem:[%s1124_s4 + $0x38] sm:$0xff]  ;;  %s312_s27 = scalar_lea.vmem %s1125_s5, %s977_s26  ;;  %s317_s21 = scalar_lea.vmem %s1126_s6, %s977_s26 }
   0xf   : > { %v325_v2 = vsel %vm324_vm0, %v983_v0, 0.0  ;;  %v328_v3 = vsel %vm324_vm0, %v985_v1, 0.0  ;;  %v995_v4 = vld [vmem:[%s302_s9 + $0x8] sm:$0xff]  ;;  %v339_v5 = vld [vmem:[%s302_s9] sm:$0xff]  ;;  %839 = vmatpush3.msra.mxu1 %v372_v7  ;;  %v364_v16 = vld [vmem:[%s1124_s4 + $0x30] sm:$0xff] }
  0x10   : > { %326 = vadd.xlane.f32.xlu0 %v325_v2  ;;  %829 = vmatprep.subr.mxu0 %v995_v4  ;;  %v363_v17 = vld [vmem:[%s1124_s4 + $0x28] sm:$0xff]  ;;  %v362_v18 = vld [vmem:[%s1124_s4 + $0x20] sm:$0xff]  ;;  %v361_v19 = vld [vmem:[%s1124_s4 + $0x18] sm:$0xff] }
  0x11   : > { %830 = vmatpush3.msra.mxu0 %v995_v4  ;;  %868 = vmatprep.mubr.f32.mxu1 %v339_v5  ;;  %v360_v20 = vld [vmem:[%s1124_s4 + $0x10] sm:$0xff]  ;;  %v359_v21 = vld [vmem:[%s1124_s4 + $0x8] sm:$0xff]  ;;  %v353_v32 = vld [vmem:[%s1122_s2 + $0x60] sm:$0xff] }
  0x12   : > { %831 = vmatprep.subr.mxu0 %v339_v5  ;;  %840 = vmatprep.subr.mxu1 %v371_v9  ;;  %v355_v30 = vld [vmem:[%s1122_s2 + $0x70] sm:$0xff]  ;;  %v354_v31 = vld [vmem:[%s1122_s2 + $0x68] sm:$0xff]  ;;  %v352_v33 = vld [vmem:[%s1122_s2 + $0x58] sm:$0xff] }
  0x13   : > { %832 = vmatpush3.msra.mxu0 %v339_v5  ;;  %841 = vmatpush3.msra.mxu1 %v371_v9  ;;  %v351_v34 = vld [vmem:[%s1122_s2 + $0x50] sm:$0xff]  ;;  %v350_v35 = vld [vmem:[%s1122_s2 + $0x48] sm:$0xff]  ;;  %v349_v36 = vld [vmem:[%s1122_s2 + $0x40] sm:$0xff] }
  0x14   : > { %329 = vadd.xlane.f32.xlu0 %v328_v3  ;;  %871 = vmatprep.subr.mxu0 %v356_v8  ;;  %v348_v37 = vld [vmem:[%s1122_s2 + $0x38] sm:$0xff]  ;;  %v347_v38 = vld [vmem:[%s1122_s2 + $0x30] sm:$0xff]  ;;  %v346_v39 = vld [vmem:[%s1122_s2 + $0x28] sm:$0xff] }
  0x15   : > { %842 = vmatprep.subr.mxu1 %v370_v10  ;;  %v345_v40 = vld [vmem:[%s1122_s2 + $0x20] sm:$0xff]  ;;  %v344_v41 = vld [vmem:[%s1122_s2 + $0x18] sm:$0xff]  ;;  %v343_v42 = vld [vmem:[%s1122_s2 + $0x10] sm:$0xff] }
  0x16   : > { %843 = vmatpush3.msra.mxu1 %v370_v10  ;;  %v358_v43 = vld [vmem:[%s1124_s4] sm:$0xff]  ;;  %v342_v44 = vld [vmem:[%s1122_s2 + $0x8] sm:$0xff] }
  0x17   : > { %844 = vmatprep.subr.mxu1 %v369_v11  ;;  %v341_v45 = vld [vmem:[%s1122_s2] sm:$0xff] }
  0x18   : > { %845 = vmatpush3.msra.mxu1 %v369_v11  ;;  %v782_v49 = vld [vmem:[%s1123_s3] ss:$0 sm:$0xff] }
  0x19   : > { %846 = vmatprep.subr.mxu1 %v368_v12 }
  0x1a   : > { %847 = vmatpush3.msra.mxu1 %v368_v12 }
  0x1b   : > { %848 = vmatprep.subr.mxu1 %v367_v13 }
  0x1c   : > { %849 = vmatpush3.msra.mxu1 %v367_v13 }
  0x1d   : > { %850 = vmatprep.subr.mxu1 %v366_v14 }
  0x1e   : > { %851 = vmatpush3.msra.mxu1 %v366_v14 }
  0x1f   : > { %852 = vmatprep.subr.mxu1 %v365_v15 }
  0x20   : > { %853 = vmatpush3.msra.mxu1 %v365_v15 }
  0x21   : > { %854 = vmatprep.subr.mxu1 %v364_v16 }
  0x22   : > { %855 = vmatpush3.msra.mxu1 %v364_v16 }
  0x23   : > { %856 = vmatprep.subr.mxu1 %v363_v17 }
  0x24   : > { %857 = vmatpush3.msra.mxu1 %v363_v17 }
  0x25   : > { %858 = vmatprep.subr.mxu1 %v362_v18 }
  0x26   : > { %859 = vmatpush3.msra.mxu1 %v362_v18 }
  0x27   : > { %860 = vmatprep.subr.mxu1 %v361_v19 }
  0x28   : > { %861 = vmatpush3.msra.mxu1 %v361_v19 }
  0x29   : > { %862 = vmatprep.subr.mxu1 %v360_v20 }
  0x2a   : > { %863 = vmatpush3.msra.mxu1 %v360_v20 }
  0x2b   : > { %864 = vmatprep.subr.mxu1 %v359_v21 }
  0x2c   : > { %865 = vmatpush3.msra.mxu1 %v359_v21 }
  0x2d   : > { %866 = vmatprep.subr.mxu1 %v358_v43 }
  0x2e   : > { %867 = vmatpush3.msra.mxu1 %v358_v43 }
  0x2f   : > { %869 = vmatmul.mubr.f32.vlgmr.msra.gmra.mxu1 %v995_v4 }
  0x99   : > { %v327_v22 = vpop.xlane.xlu0 %326 }
  0x9a   : > { %v331_v23 = vmax.f32 %v327_v22, 1.0 }
  0x9c   : > { %914 = vrcp.f32 %v331_v23 }
  0x9d   : > { %v330_v24 = vpop.xlane.xlu0 %329 }
  0x9e   : > { %v332_v25 = vmax.f32 %v330_v24, 1.0 }
  0xa0   : > { %916 = vrcp.f32 %v332_v25 }
  0xa9   : > { %v915_v26 = vpop.eup %914 }
  0xaa   : > { %v334_v27 = vmul.f32 %v915_v26, %v983_v0 }
  0xac   : > { %337 = vst.msk [vmem:[%s312_s27] sm:$0xff] %vm324_vm0, %v334_v27  ;;  %833 = vmatprep.mubr.msk.f32.mxu0 %vm324_vm0, %v334_v27 }
  0xad   : > { %v917_v28 = vpop.eup %916 }
  0xae   : > { %v336_v29 = vmul.f32 %v917_v28, %v985_v1 }
  0xb0   : > { %338 = vst.msk [vmem:[%s312_s27 + $0x8] sm:$0xff] %vm324_vm0, %v336_v29  ;;  %834 = vmatmul.mubr.msk.f32.vlgmr.msra.gmra.mxu0 %vm324_vm0, %v336_v29  ;;  %s321_s27 = scalar_lea.vmem %s1127_s7, %s779_s22 }
  0xb1   : > { %872 = vmatpush3.msra.mxu0 %v356_v8 }
  0xb2   : > { %873 = vmatprep.subr.mxu0 %v355_v30 }
  0xb3   : > { %874 = vmatpush3.msra.mxu0 %v355_v30 }
  0xb4   : > { %875 = vmatprep.subr.mxu0 %v354_v31 }
  0xb5   : > { %876 = vmatpush3.msra.mxu0 %v354_v31 }
  0xb6   : > { %877 = vmatprep.subr.mxu0 %v353_v32 }
  0xb7   : > { %878 = vmatpush3.msra.mxu0 %v353_v32 }
  0xb8   : > { %879 = vmatprep.subr.mxu0 %v352_v33 }
  0xb9   : > { %880 = vmatpush3.msra.mxu0 %v352_v33 }
  0xba   : > { %881 = vmatprep.subr.mxu0 %v351_v34 }
  0xbb   : > { %882 = vmatpush3.msra.mxu0 %v351_v34 }
  0xbc   : > { %883 = vmatprep.subr.mxu0 %v350_v35 }
  0xbd   : > { %884 = vmatpush3.msra.mxu0 %v350_v35 }
  0xbe   : > { %885 = vmatprep.subr.mxu0 %v349_v36 }
  0xbf   : > { %886 = vmatpush3.msra.mxu0 %v349_v36 }
  0xc0   : > { %887 = vmatprep.subr.mxu0 %v348_v37 }
  0xc1   : > { %888 = vmatpush3.msra.mxu0 %v348_v37 }
  0xc2   : > { %889 = vmatprep.subr.mxu0 %v347_v38 }
  0xc3   : > { %890 = vmatpush3.msra.mxu0 %v347_v38 }
  0xc4   : > { %891 = vmatprep.subr.mxu0 %v346_v39 }
  0xc5   : > { %892 = vmatpush3.msra.mxu0 %v346_v39 }
  0xc6   : > { %893 = vmatprep.subr.mxu0 %v345_v40 }
  0xc7   : > { %894 = vmatpush3.msra.mxu0 %v345_v40 }
  0xc8   : > { %895 = vmatprep.subr.mxu0 %v344_v41 }
  0xc9   : > { %896 = vmatpush3.msra.mxu0 %v344_v41 }
  0xca   : > { %897 = vmatprep.subr.mxu0 %v343_v42 }
  0xcb   : > { %898 = vmatpush3.msra.mxu0 %v343_v42 }
  0xcc   : > { %899 = vmatprep.subr.mxu0 %v342_v44 }
  0xcd   : > { %900 = vmatpush3.msra.mxu0 %v342_v44 }
  0xce   : > { %901 = vmatprep.subr.mxu0 %v341_v45 }
  0xcf   : > { %902 = vmatpush3.msra.mxu0 %v341_v45 }
  0xef   : > { %v870_v48 = vpop.f32.mrf.mxu1 }
  0xf1   : > { %v521_v52 = vpop.f32.mrf.mxu1 }
 0x170   : > { %v835_v46 = vpop.f32.mrf.mxu0 }
 0x172   : > { %v446_v47 = vpop.f32.mrf.mxu0 }
 0x173   : > { %903 = vmatprep.mubr.f32.mxu0 %v446_v47 }
 0x174   : > { %904 = vmatmul.mubr.f32.vlgmr.msra.gmra.mxu0 %v835_v46 }
 0x234   : > { %v905_v50 = vpop.f32.mrf.mxu0 }
 0x235   : > { %v602_v51 = vadd.f32 %v905_v50, %v870_v48 }
 0x236   : > { %v596_v53 = vpop.f32.mrf.mxu0 }
 0x237   : > { %v612_v54 = vadd.f32 %v782_v49, %v602_v51  ;;  %v597_v55 = vadd.f32 %v596_v53, %v521_v52 }
 0x239   : > { %v614_v56 = vmax.f32 %v612_v54, 0.0  ;;  %v611_v57 = vadd.f32 %v782_v49, %v597_v55 }
 0x23b   : > { %616 = vst [vmem:[%s317_s21 + $0x8] sm:$0xff] %v614_v56  ;;  %v613_v58 = vmax.f32 %v611_v57, 0.0  ;;  %v626_v59 = vmul.f32 %v614_v56, %v614_v56 }
 0x23d   : > { %615 = vst [vmem:[%s317_s21] sm:$0xff] %v613_v58  ;;  %v617_v60 = vadd.f32 %v614_v56, %v613_v58  ;;  %v625_v61 = vmul.f32 %v613_v58, %v613_v58 }
 0x23f   : > { %v618_v62 = vrot.slane %v617_v60, 4  ;;  %v627_v63 = vadd.f32 %v626_v59, %v625_v61 }
 0x241   : > { %v619_v0 = vadd.f32 %v618_v62, %v617_v60  ;;  %v628_v1 = vrot.slane %v627_v63, 4 }
 0x243   : > { %v620_v2 = vrot.slane %v619_v0, 2  ;;  %v629_v3 = vadd.f32 %v628_v1, %v627_v63 }
 0x245   : > { %v621_v4 = vadd.f32 %v620_v2, %v619_v0  ;;  %v630_v5 = vrot.slane %v629_v3, 2 }
 0x247   : > { %v622_v6 = vrot.slane %v621_v4, 1  ;;  %v631_v7 = vadd.f32 %v630_v5, %v629_v3 }
 0x249   : > { %v623_v8 = vadd.f32 %v622_v6, %v621_v4  ;;  %v632_v9 = vrot.slane %v631_v7, 1 }
 0x24b   : > { %624 = vst [vmem:[%s321_s27] sm:$0x1] %v623_v8  ;;  %v633_v10 = vadd.f32 %v632_v9, %v631_v7 }
 0x24d   : > { %634 = vst [vmem:[%s321_s27 + $0x1] sm:$0x1] %v633_v10 }
 0x24e PF: > { %s18_s24 = sadd.s32 1, %s924_s24  }
 0x24f   : > { %p15_p4 = scmp.ge.s32.totalorder %s18_s24, 4  }
 0x251   :  { %17 = sbr.rel (!%p15_p4) target bundleno = 1 (0x1), region = 97 }

</bundles_post_ra>
